<compile_context>
chip_gen: v7x
topology: tpu7x:2x2x1
jax: 0.10.0
libtpu: 0.0.40
codegen_flags: <defaults>
</compile_context>

<pallas_src>
import jax
import jax.numpy as jnp
from jax import lax
from jax.experimental import pallas as pl
from jax.experimental.pallas import tpu as pltpu

EPS = 1e-5          # PyTorch BatchNorm2d default eps
LANE = 128
MXU_K = 256         # v6e/v7x MXU contraction depth (128-multiples OK on v5e)
MXU_M = 256         # target rows per matmul tile


def _round_up(x, m):
    return (x + m - 1) // m * m


def _img_spec(tail):
    """Block one leading (batch) axis; all trailing dims full."""
    nd = len(tail)
    return pl.BlockSpec((1,) + tuple(tail), lambda n: (n,) + (0,) * nd)


def _resident_spec(shape):
    """Whole array resident in VMEM across all grid steps (constant index_map)."""
    nd = len(shape)
    return pl.BlockSpec(tuple(shape), lambda n: (0,) * nd)


def _row_tile(Ho, Wo):
    """Rows per M-tile so tile_rows*Wo ~= MXU_M; keeps the f32 acc in vregs."""
    return max(1, min(Ho, max(1, MXU_M // max(Wo, 1))))


def _taps_per_dot(k_tap):
    """How many 3x3 taps to fold into one matmul so K >= MXU_K (or all 9)."""
    return max(1, min(9, -(-MXU_K // k_tap)))


def _grouped_conv_dot(slabs, w_ref, k_tap, cout_p, taps_per_dot):
    """sum_t slabs[t] @ w[t], with taps folded into large-K matmuls.
    w_ref has shape (9*k_tap, cout_p); slabs are 9 arrays of (m, k_tap) bf16."""
    m = slabs[0].shape[0]
    acc = jnp.zeros((m, cout_p), jnp.float32)
    t = 0
    while t < 9:
        g = min(taps_per_dot, 9 - t)
        lhs = slabs[t] if g == 1 else jnp.concatenate(slabs[t:t + g], axis=1)
        acc = acc + jnp.dot(lhs, w_ref[t * k_tap:(t + g) * k_tap, :],
                            preferred_element_type=jnp.float32)
        t += g
    return acc


# ---------------------------------------------------------------------------
# Kernels
# ---------------------------------------------------------------------------
def _make_pass1_kernel(s, Ho, Wo, cin_p, cout_p, with_proj):
    """conv1 (3x3, stride s, pad 1) with tap folding + row tiling; optional
    fused 1x1 stride-s projection (reuses the centre-tap slab).  Emits
    per-image partial BN stats for conv1 (and the projection)."""
    tile_rows = _row_tile(Ho, Wo)
    tpd = _taps_per_dot(cin_p)

    def kernel(*refs):
        if with_proj:
            x_ref, w_ref, ws_ref, y_ref, st_ref, ys_ref, sts_ref = refs
        else:
            x_ref, w_ref, y_ref, st_ref = refs

        sum1 = jnp.zeros((1, cout_p), jnp.float32)
        ssq1 = jnp.zeros((1, cout_p), jnp.float32)
        if with_proj:
            sums = jnp.zeros((1, cout_p), jnp.float32)
            ssqs = jnp.zeros((1, cout_p), jnp.float32)

        for r0 in range(0, Ho, tile_rows):
            th = min(tile_rows, Ho - r0)
            m = th * Wo
            # 9 tap slabs for this row tile, computed once (and reused below).
            slabs = []
            for dy in range(3):
                py, ay = dy % s, dy // s
                for dx in range(3):
                    px, ax = dx % s, dx // s
                    sl = x_ref[0, py * s + px,
                               ay + r0: ay + r0 + th, ax: ax + Wo, :]
                    slabs.append(sl.reshape(m, cin_p))

            acc = _grouped_conv_dot(slabs, w_ref, cin_p, cout_p, tpd)
            y_ref[0, r0:r0 + th, :, :] = acc.reshape(th, Wo, cout_p).astype(y_ref.dtype)
            sum1 = sum1 + jnp.sum(acc, axis=0, keepdims=True)
            ssq1 = ssq1 + jnp.sum(acc * acc, axis=0, keepdims=True)

            if with_proj:
                # 1x1 stride-s shortcut == centre tap (dy=dx=1); reuse its slab.
                accs = jnp.dot(slabs[4], ws_ref[...],
                               preferred_element_type=jnp.float32)
                ys_ref[0, r0:r0 + th, :, :] = (
                    accs.reshape(th, Wo, cout_p).astype(ys_ref.dtype))
                sums = sums + jnp.sum(accs, axis=0, keepdims=True)
                ssqs = ssqs + jnp.sum(accs * accs, axis=0, keepdims=True)

        st_ref[0, 0:1, :] = sum1
        st_ref[0, 1:2, :] = ssq1
        if with_proj:
            sts_ref[0, 0:1, :] = sums
            sts_ref[0, 1:2, :] = ssqs

    return kernel


def _make_pass2_kernel(Ho, Wo, C):
    """bn1+relu in-kernel, zero-pad into a persistent VMEM scratch (only the
    1-px border is zeroed each step), then conv2 (3x3, stride 1) with tap
    folding + row tiling; emits per-image partial BN stats."""
    tile_rows = _row_tile(Ho, Wo)
    tpd = _taps_per_dot(C)

    def kernel(y1_ref, sc_ref, bi_ref, w_ref, y2_ref, st_ref, pad_ref):
        # Zero only the 1-pixel border (O(perimeter), not O(area)).  The
        # interior store below must never touch the border — keep it that way.
        pad_ref[0:1, :, :] = jnp.zeros((1, Wo + 2, C), pad_ref.dtype)
        pad_ref[Ho + 1:Ho + 2, :, :] = jnp.zeros((1, Wo + 2, C), pad_ref.dtype)
        pad_ref[1:Ho + 1, 0:1, :] = jnp.zeros((Ho, 1, C), pad_ref.dtype)
        pad_ref[1:Ho + 1, Wo + 1:Wo + 2, :] = jnp.zeros((Ho, 1, C), pad_ref.dtype)

        # bn1 + relu -> interior of the padded activation.
        a = jnp.maximum(
            y1_ref[0].astype(jnp.float32) * sc_ref[...] + bi_ref[...], 0.0)
        pad_ref[1:Ho + 1, 1:Wo + 1, :] = a.astype(pad_ref.dtype)

        sum2 = jnp.zeros((1, C), jnp.float32)
        ssq2 = jnp.zeros((1, C), jnp.float32)
        for r0 in range(0, Ho, tile_rows):
            th = min(tile_rows, Ho - r0)
            m = th * Wo
            slabs = [pad_ref[dy + r0: dy + r0 + th, dx: dx + Wo, :].reshape(m, C)
                     for dy in range(3) for dx in range(3)]
            acc = _grouped_conv_dot(slabs, w_ref, C, C, tpd)
            y2_ref[0, r0:r0 + th, :, :] = acc.reshape(th, Wo, C).astype(y2_ref.dtype)
            sum2 = sum2 + jnp.sum(acc, axis=0, keepdims=True)
            ssq2 = ssq2 + jnp.sum(acc * acc, axis=0, keepdims=True)

        st_ref[0, 0:1, :] = sum2
        st_ref[0, 1:2, :] = ssq2

    return kernel


def _make_pass3_proj_kernel(planes):
    def kernel(y2_ref, ys_ref, s2_ref, b2_ref, ss_ref, bs_ref, o_ref):
        y = y2_ref[0].astype(jnp.float32) * s2_ref[...] + b2_ref[...]
        sh = ys_ref[0].astype(jnp.float32) * ss_ref[...] + bs_ref[...]
        o_ref[0] = jnp.maximum(y + sh, 0.0)[..., :planes].astype(o_ref.dtype)
    return kernel


def _make_pass3_id_kernel(planes):
    def kernel(y2_ref, x_ref, s2_ref, b2_ref, o_ref):
        y = (y2_ref[0].astype(jnp.float32) * s2_ref[...] + b2_ref[...])[..., :planes]
        o_ref[0] = jnp.maximum(y + x_ref[0].astype(jnp.float32), 0.0).astype(o_ref.dtype)
    return kernel


# ---------------------------------------------------------------------------
# JAX glue
# ---------------------------------------------------------------------------
def _phase_split(x_nhwc, stride, cin_p):
    """Pad (conv padding 1 + alignment) and split into stride**2 phase planes so
    every conv tap is a contiguous static slice inside the kernel.
    xph[n, p*stride+q, a, b, c] == x_padded[n, stride*a+p, stride*b+q, c]."""
    N, H, W, C = x_nhwc.shape
    Ho = (H - 1) // stride + 1
    Wo = (W - 1) // stride + 1
    n_a = 2 // stride + 1
    A, B = Ho + n_a - 1, Wo + n_a - 1
    xp = jnp.pad(
        x_nhwc,
        ((0, 0), (1, stride * A - H - 1), (1, stride * B - W - 1), (0, cin_p - C)),
    ).astype(jnp.bfloat16)
    xph = xp.reshape(N, A, stride, B, stride, cin_p).transpose(0, 2, 4, 1, 3, 5)
    xph = xph.reshape(N, stride * stride, A, B, cin_p)
    return xph, Ho, Wo, A, B


def _prep_w3x3(w_hwio, cin_p, cout_p):
    """HWIO (3,3,ci,co) -> (9*cin_p, cout_p) bf16, tap-major / cin-minor on K."""
    kh, kw, ci, co = w_hwio.shape
    w = jnp.pad(w_hwio, ((0, 0), (0, 0), (0, cin_p - ci), (0, cout_p - co)))
    return w.reshape(kh * kw * cin_p, cout_p).astype(jnp.bfloat16)


def _prep_vec(v, cout_p):
    v = v.reshape(-1)
    return jnp.pad(v, (0, cout_p - v.shape[0])).astype(jnp.float32)


def _bn_scale_bias(stats, count, gamma_p, beta_p):
    """Fold global (batch) statistics into per-channel scale/bias (f32)."""
    total = jnp.sum(stats, axis=0)                          # (2, cout_p)
    mean = total[0] / count
    var = jnp.maximum(total[1] / count - mean * mean, 0.0)  # biased, train mode
    scale = gamma_p * lax.rsqrt(var + EPS)
    bias = beta_p - mean * scale
    return scale.reshape(1, -1), bias.reshape(1, -1)


def _vmem_capacity_bytes():
    try:
        return int(pltpu.get_tpu_info().vmem_capacity_bytes)
    except Exception:
        return 128 * 1024 * 1024


def _cparams(need_bytes):
    """Footprint-derived VMEM limit, capped at 3/4 of physical VMEM (v7x=64MiB)."""
    cap = _vmem_capacity_bytes()
    limit = max(int(need_bytes) + (8 << 20), 16 << 20)
    limit = min(limit, (cap * 3) // 4)
    return pltpu.CompilerParams(
        dimension_semantics=("parallel",),
        vmem_limit_bytes=limit,
    )


def basic_block_forward(x_nhwc, params, stride):
    """Pallas BasicBlock forward. x_nhwc: (N,H,W,Cin) f32 -> (N,Ho,Wo,planes) f32."""
    N, H, W, Cin = x_nhwc.shape
    planes = params["w1"].shape[-1]
    # Channels: lane-dense (128) when large, 16-aligned (bf16 sublane packing)
    # when small — the tap fold supplies a wide contraction for small Cin.
    cin_p = _round_up(Cin, LANE) if Cin >= LANE else _round_up(Cin, 16)
    cout_p = _round_up(planes, LANE)
    has_proj = (stride != 1) or (Cin != planes)

    xph, Ho, Wo, A, B = _phase_split(x_nhwc, stride, cin_p)
    count = N * Ho * Wo

    w1 = _prep_w3x3(params["w1"], cin_p, cout_p)      # (9*cin_p, cout_p)
    w2 = _prep_w3x3(params["w2"], cout_p, cout_p)     # (9*cout_p, cout_p)
    g1, b1 = _prep_vec(params["g1"], cout_p), _prep_vec(params["b1"], cout_p)
    g2, b2 = _prep_vec(params["g2"], cout_p), _prep_vec(params["b2"], cout_p)

    img = jax.ShapeDtypeStruct((N, Ho, Wo, cout_p), jnp.bfloat16)
    st = jax.ShapeDtypeStruct((N, 2, cout_p), jnp.float32)
    img_spec = _img_spec((Ho, Wo, cout_p))
    st_spec = _img_spec((2, cout_p))
    vec_spec = _resident_spec((1, cout_p))

    img_blk = Ho * Wo * cout_p * 2
    st_blk = 2 * cout_p * 4
    x_blk = stride * stride * A * B * cin_p * 2
    tmp_f32 = Ho * Wo * cout_p * 4

    # -------- pass 1: conv1 (+ fused 1x1 projection), per-image partial stats
    in_specs1 = [_img_spec((stride * stride, A, B, cin_p)),
                 _resident_spec((9 * cin_p, cout_p))]
    args1 = [xph, w1]
    out_shape1 = [img, st]
    out_specs1 = [img_spec, st_spec]
    flops1 = 2 * count * 9 * cin_p * cout_p
    bytes1 = xph.size * 2 + w1.size * 2 + count * cout_p * 2 + N * 2 * cout_p * 4
    need1 = 2 * (x_blk + img_blk + st_blk) + 2 * w1.size * 2 + tmp_f32
    if has_proj:
        ws = jnp.pad(params["ws"].reshape(Cin, planes),
                     ((0, cin_p - Cin), (0, cout_p - planes))).astype(jnp.bfloat16)
        in_specs1.append(_resident_spec((cin_p, cout_p)))
        args1.append(ws)
        out_shape1 += [img, st]
        out_specs1 += [img_spec, st_spec]
        flops1 += 2 * count * cin_p * cout_p
        bytes1 += ws.size * 2 + count * cout_p * 2 + N * 2 * cout_p * 4
        need1 += 2 * (img_blk + st_blk) + 2 * ws.size * 2

    res1 = pl.pallas_call(
        _make_pass1_kernel(stride, Ho, Wo, cin_p, cout_p, has_proj),
        grid=(N,),
        out_shape=tuple(out_shape1),
        in_specs=in_specs1,
        out_specs=out_specs1,
        compiler_params=_cparams(need1),
        cost_estimate=pl.CostEstimate(flops=flops1, transcendentals=0,
                                      bytes_accessed=bytes1),
    )(*args1)
    if has_proj:
        y1, st1, ysc, stsc = res1
    else:
        y1, st1 = res1

    scale1, bias1 = _bn_scale_bias(st1, count, g1, b1)

    # -------- pass 2: bn1+relu -> conv2, per-image partial stats
    pad_bytes = (Ho + 2) * (Wo + 2) * cout_p * 2
    flops2 = 2 * count * 9 * cout_p * cout_p
    bytes2 = count * cout_p * 4 + w2.size * 2 + N * 2 * cout_p * 4
    need2 = (2 * (2 * img_blk + st_blk + 2 * cout_p * 4)
             + 2 * w2.size * 2 + pad_bytes + tmp_f32)
    y2, st2 = pl.pallas_call(
        _make_pass2_kernel(Ho, Wo, cout_p),
        grid=(N,),
        out_shape=(img, st),
        in_specs=[img_spec, vec_spec, vec_spec,
                  _resident_spec((9 * cout_p, cout_p))],
        out_specs=[img_spec, st_spec],
        scratch_shapes=[pltpu.VMEM((Ho + 2, Wo + 2, cout_p), jnp.bfloat16)],
        compiler_params=_cparams(need2),
        cost_estimate=pl.CostEstimate(flops=flops2, transcendentals=0,
                                      bytes_accessed=bytes2),
    )(y1, scale1, bias1, w2)

    scale2, bias2 = _bn_scale_bias(st2, count, g2, b2)

    # -------- pass 3: bn2 + shortcut add + relu, stored directly unpadded
    out_shape3 = jax.ShapeDtypeStruct((N, Ho, Wo, planes), jnp.float32)
    out_spec3 = pl.BlockSpec((1, Ho, Wo, planes), lambda n: (n, 0, 0, 0))
    out_blk3 = Ho * Wo * planes * 4
    if has_proj:
        gs, bs = _prep_vec(params["gs"], cout_p), _prep_vec(params["bs"], cout_p)
        scale_s, bias_s = _bn_scale_bias(stsc, count, gs, bs)
        need3 = 2 * (2 * img_blk + out_blk3) + 4 * cout_p * 4 + tmp_f32
        out = pl.pallas_call(
            _make_pass3_proj_kernel(planes),
            grid=(N,),
            out_shape=out_shape3,
            in_specs=[img_spec, img_spec, vec_spec, vec_spec, vec_spec, vec_spec],
            out_specs=out_spec3,
            compiler_params=_cparams(need3),
        )(y2, ysc, scale2, bias2, scale_s, bias_s)
    else:
        x_bf = x_nhwc.astype(jnp.bfloat16)          # bf16 shortcut read (mem-bound pass)
        x_spec = _img_spec((H, W, Cin))
        need3 = 2 * (img_blk + H * W * Cin * 2 + out_blk3) + 2 * cout_p * 4 + tmp_f32
        out = pl.pallas_call(
            _make_pass3_id_kernel(planes),
            grid=(N,),
            out_shape=out_shape3,
            in_specs=[img_spec, x_spec, vec_spec, vec_spec],
            out_specs=out_spec3,
            compiler_params=_cparams(need3),
        )(y2, x_bf, scale2, bias2)

    return out


# ---------------------------------------------------------------------------
# Pure-JAX reference (correctness check)
# ---------------------------------------------------------------------------
def _conv_ref(x, w_hwio, stride, padding):
    return lax.conv_general_dilated(x, w_hwio, (stride, stride), padding,
                                    dimension_numbers=("NHWC", "HWIO", "NHWC"))


def _bn_ref(y, g, b):
    mean = jnp.mean(y, axis=(0, 1, 2), keepdims=True)
    var = jnp.mean((y - mean) ** 2, axis=(0, 1, 2), keepdims=True)
    return (y - mean) * lax.rsqrt(var + EPS) * g.reshape(1, 1, 1, -1) + b.reshape(1, 1, 1, -1)


def basic_block_reference(x_nhwc, params, stride):
    Cin = x_nhwc.shape[-1]
    planes = params["w1"].shape[-1]
    out = _conv_ref(x_nhwc, params["w1"], stride, ((1, 1), (1, 1)))
    out = jnp.maximum(_bn_ref(out, params["g1"], params["b1"]), 0.0)
    out = _conv_ref(out, params["w2"], 1, ((1, 1), (1, 1)))
    out = _bn_ref(out, params["g2"], params["b2"])
    if (stride != 1) or (Cin != planes):
        sc = _conv_ref(x_nhwc, params["ws"], stride, ((0, 0), (0, 0)))
        sc = _bn_ref(sc, params["gs"], params["bs"])
    else:
        sc = x_nhwc
    return jnp.maximum(out + sc, 0.0)


# ---------------------------------------------------------------------------
if __name__ == "__main__":
    key = jax.random.PRNGKey(0)

    def make_params(keys, cin, planes):
        return {
            # conv weights stored HWIO (kh, kw, cin, cout)
            "w1": 0.1 * jax.random.normal(keys[0], (3, 3, cin, planes), jnp.float32),
            "w2": 0.1 * jax.random.normal(keys[1], (3, 3, planes, planes), jnp.float32),
            "ws": 0.1 * jax.random.normal(keys[2], (1, 1, cin, planes), jnp.float32),
            # BatchNorm affine params: PyTorch defaults (weight=1, bias=0)
            "g1": jnp.ones((planes,), jnp.float32), "b1": jnp.zeros((planes,), jnp.float32),
            "g2": jnp.ones((planes,), jnp.float32), "b2": jnp.zeros((planes,), jnp.float32),
            "gs": jnp.ones((planes,), jnp.float32), "bs": jnp.zeros((planes,), jnp.float32),
        }

    k = jax.random.split(key, 8)

    # Case 1: projection shortcut (stride=2, channel change)
    N, Cin, H, W, planes, stride = 2, 4, 16, 16, 8, 2
    x_nchw = jax.random.normal(k[0], (N, Cin, H, W), jnp.float32)   # PyTorch NCHW input
    x_nhwc = jnp.transpose(x_nchw, (0, 2, 3, 1))
    params = make_params(k[1:4], Cin, planes)

    out = jax.block_until_ready(basic_block_forward(x_nhwc, params, stride))
    ref = basic_block_reference(x_nhwc, params, stride)
    assert out.shape == (N, H // stride, W // stride, planes), out.shape
    err = float(jnp.max(jnp.abs(out - ref)))
    assert err < 5e-2, err   # bf16 MXU operands vs f32 reference

    # Case 2: identity shortcut (stride=1, Cin == planes)
    N2, C2, H2, W2 = 2, 8, 16, 16
    x2 = jnp.transpose(jax.random.normal(k[4], (N2, C2, H2, W2), jnp.float32), (0, 2, 3, 1))
    params2 = make_params(k[5:8], C2, C2)
    out2 = jax.block_until_ready(basic_block_forward(x2, params2, 1))
    ref2 = basic_block_reference(x2, params2, 1)
    assert out2.shape == (N2, H2, W2, C2), out2.shape
    err2 = float(jnp.max(jnp.abs(out2 - ref2)))
    assert err2 < 5e-2, err2

    print("KERNEL_OK")
</pallas_src>

<mosaic_0001>
module attributes {stable_mosaic.version = 11 : i64} {
  func.func @kernel(%arg0: i32, %arg1: memref<1x4x9x9x16xbf16, #tpu.memory_space<vmem>>, %arg2: memref<144x128xbf16, #tpu.memory_space<vmem>>, %arg3: memref<16x128xbf16, #tpu.memory_space<vmem>>, %arg4: memref<1x8x8x128xbf16, #tpu.memory_space<vmem>>, %arg5: memref<1x2x128xf32, #tpu.memory_space<vmem>>, %arg6: memref<1x8x8x128xbf16, #tpu.memory_space<vmem>>, %arg7: memref<1x2x128xf32, #tpu.memory_space<vmem>>) attributes {dimension_semantics = [#tpu.dimension_semantics<parallel>], iteration_bounds = array<i64: 2>, scalar_prefetch = 0 : i64, scratch_operands = 0 : i64, tpu.core_type = #tpu.core_type<tc>, window_params = [{transform_indices = @transform_0, window_bounds = array<i64: 1, 4, 9, 9, 16>}, {pipeline_mode = #tpu.pipeline_mode<synchronous>, transform_indices = @transform_1, window_bounds = array<i64: 144, 128>}, {pipeline_mode = #tpu.pipeline_mode<synchronous>, transform_indices = @transform_2, window_bounds = array<i64: 16, 128>}, {transform_indices = @transform_3, window_bounds = array<i64: 1, 8, 8, 128>}, {transform_indices = @transform_4, window_bounds = array<i64: 1, 2, 128>}, {transform_indices = @transform_5, window_bounds = array<i64: 1, 8, 8, 128>}, {transform_indices = @transform_6, window_bounds = array<i64: 1, 2, 128>}]} {
    %cst = arith.constant 0.000000e+00 : f32
    %0 = vector.broadcast %cst : f32 to vector<1x128xf32>
    %cst_0 = arith.constant 0.000000e+00 : f32
    %1 = vector.broadcast %cst_0 : f32 to vector<1x128xf32>
    %cst_1 = arith.constant 0.000000e+00 : f32
    %2 = vector.broadcast %cst_1 : f32 to vector<1x128xf32>
    %cst_2 = arith.constant 0.000000e+00 : f32
    %3 = vector.broadcast %cst_2 : f32 to vector<1x128xf32>
    %c0 = arith.constant 0 : index
    %c0_3 = arith.constant 0 : index
    %c0_4 = arith.constant 0 : index
    %c0_5 = arith.constant 0 : index
    %c0_6 = arith.constant 0 : index
    %4 = vector.load %arg1[%c0, %c0_3, %c0_4, %c0_5, %c0_6] : memref<1x4x9x9x16xbf16, #tpu.memory_space<vmem>>, vector<1x1x8x8x16xbf16>
    %5 = vector.shape_cast %4 : vector<1x1x8x8x16xbf16> to vector<8x8x16xbf16>
    %6 = vector.shape_cast %5 : vector<8x8x16xbf16> to vector<64x16xbf16>
    %c0_7 = arith.constant 0 : index
    %c1 = arith.constant 1 : index
    %c0_8 = arith.constant 0 : index
    %c0_9 = arith.constant 0 : index
    %c0_10 = arith.constant 0 : index
    %7 = vector.load %arg1[%c0_7, %c1, %c0_8, %c0_9, %c0_10] : memref<1x4x9x9x16xbf16, #tpu.memory_space<vmem>>, vector<1x1x8x8x16xbf16>
    %8 = vector.shape_cast %7 : vector<1x1x8x8x16xbf16> to vector<8x8x16xbf16>
    %9 = vector.shape_cast %8 : vector<8x8x16xbf16> to vector<64x16xbf16>
    %c0_11 = arith.constant 0 : index
    %c0_12 = arith.constant 0 : index
    %c0_13 = arith.constant 0 : index
    %c1_14 = arith.constant 1 : index
    %c0_15 = arith.constant 0 : index
    %10 = vector.load %arg1[%c0_11, %c0_12, %c0_13, %c1_14, %c0_15] : memref<1x4x9x9x16xbf16, #tpu.memory_space<vmem>>, vector<1x1x8x8x16xbf16>
    %11 = vector.shape_cast %10 : vector<1x1x8x8x16xbf16> to vector<8x8x16xbf16>
    %12 = vector.shape_cast %11 : vector<8x8x16xbf16> to vector<64x16xbf16>
    %c0_16 = arith.constant 0 : index
    %c2 = arith.constant 2 : index
    %c0_17 = arith.constant 0 : index
    %c0_18 = arith.constant 0 : index
    %c0_19 = arith.constant 0 : index
    %13 = vector.load %arg1[%c0_16, %c2, %c0_17, %c0_18, %c0_19] : memref<1x4x9x9x16xbf16, #tpu.memory_space<vmem>>, vector<1x1x8x8x16xbf16>
    %14 = vector.shape_cast %13 : vector<1x1x8x8x16xbf16> to vector<8x8x16xbf16>
    %15 = vector.shape_cast %14 : vector<8x8x16xbf16> to vector<64x16xbf16>
    %c0_20 = arith.constant 0 : index
    %c3 = arith.constant 3 : index
    %c0_21 = arith.constant 0 : index
    %c0_22 = arith.constant 0 : index
    %c0_23 = arith.constant 0 : index
    %16 = vector.load %arg1[%c0_20, %c3, %c0_21, %c0_22, %c0_23] : memref<1x4x9x9x16xbf16, #tpu.memory_space<vmem>>, vector<1x1x8x8x16xbf16>
    %17 = vector.shape_cast %16 : vector<1x1x8x8x16xbf16> to vector<8x8x16xbf16>
    %18 = vector.shape_cast %17 : vector<8x8x16xbf16> to vector<64x16xbf16>
    %c0_24 = arith.constant 0 : index
    %c2_25 = arith.constant 2 : index
    %c0_26 = arith.constant 0 : index
    %c1_27 = arith.constant 1 : index
    %c0_28 = arith.constant 0 : index
    %19 = vector.load %arg1[%c0_24, %c2_25, %c0_26, %c1_27, %c0_28] : memref<1x4x9x9x16xbf16, #tpu.memory_space<vmem>>, vector<1x1x8x8x16xbf16>
    %20 = vector.shape_cast %19 : vector<1x1x8x8x16xbf16> to vector<8x8x16xbf16>
    %21 = vector.shape_cast %20 : vector<8x8x16xbf16> to vector<64x16xbf16>
    %c0_29 = arith.constant 0 : index
    %c0_30 = arith.constant 0 : index
    %c1_31 = arith.constant 1 : index
    %c0_32 = arith.constant 0 : index
    %c0_33 = arith.constant 0 : index
    %22 = vector.load %arg1[%c0_29, %c0_30, %c1_31, %c0_32, %c0_33] : memref<1x4x9x9x16xbf16, #tpu.memory_space<vmem>>, vector<1x1x8x8x16xbf16>
    %23 = vector.shape_cast %22 : vector<1x1x8x8x16xbf16> to vector<8x8x16xbf16>
    %24 = vector.shape_cast %23 : vector<8x8x16xbf16> to vector<64x16xbf16>
    %c0_34 = arith.constant 0 : index
    %c1_35 = arith.constant 1 : index
    %c1_36 = arith.constant 1 : index
    %c0_37 = arith.constant 0 : index
    %c0_38 = arith.constant 0 : index
    %25 = vector.load %arg1[%c0_34, %c1_35, %c1_36, %c0_37, %c0_38] : memref<1x4x9x9x16xbf16, #tpu.memory_space<vmem>>, vector<1x1x8x8x16xbf16>
    %26 = vector.shape_cast %25 : vector<1x1x8x8x16xbf16> to vector<8x8x16xbf16>
    %27 = vector.shape_cast %26 : vector<8x8x16xbf16> to vector<64x16xbf16>
    %c0_39 = arith.constant 0 : index
    %c0_40 = arith.constant 0 : index
    %c1_41 = arith.constant 1 : index
    %c1_42 = arith.constant 1 : index
    %c0_43 = arith.constant 0 : index
    %28 = vector.load %arg1[%c0_39, %c0_40, %c1_41, %c1_42, %c0_43] : memref<1x4x9x9x16xbf16, #tpu.memory_space<vmem>>, vector<1x1x8x8x16xbf16>
    %29 = vector.shape_cast %28 : vector<1x1x8x8x16xbf16> to vector<8x8x16xbf16>
    %30 = vector.shape_cast %29 : vector<8x8x16xbf16> to vector<64x16xbf16>
    %cst_44 = arith.constant 0.000000e+00 : f32
    %31 = vector.broadcast %cst_44 : f32 to vector<64x128xf32>
    %32 = tpu.concatenate %6, %9, %12, %15, %18, %21, %24, %27, %30 in 1 : vector<64x16xbf16>, vector<64x16xbf16>, vector<64x16xbf16>, vector<64x16xbf16>, vector<64x16xbf16>, vector<64x16xbf16>, vector<64x16xbf16>, vector<64x16xbf16>, vector<64x16xbf16> -> vector<64x144xbf16>
    %c0_45 = arith.constant 0 : index
    %c0_46 = arith.constant 0 : index
    %33 = vector.load %arg2[%c0_45, %c0_46] : memref<144x128xbf16, #tpu.memory_space<vmem>>, vector<144x128xbf16>
    %cst_47 = arith.constant dense<0.000000e+00> : vector<64x128xf32>
    %34 = tpu.matmul %32, %33, %cst_47 {dimension_numbers = #tpu.dot_dimension_numbers<[1], [0], [0], [1], [0, 0, 1, 1], [], []>} : vector<64x144xbf16>, vector<144x128xbf16>, vector<64x128xf32> -> vector<64x128xf32>
    %35 = arith.addf %31, %34 : vector<64x128xf32>
    %36 = vector.shape_cast %35 : vector<64x128xf32> to vector<8x8x128xf32>
    %37 = arith.truncf %36 : vector<8x8x128xf32> to vector<8x8x128xbf16>
    %c0_48 = arith.constant 0 : index
    %c0_49 = arith.constant 0 : index
    %c0_50 = arith.constant 0 : index
    %c0_51 = arith.constant 0 : index
    %38 = vector.load %arg4[%c0_48, %c0_49, %c0_50, %c0_51] : memref<1x8x8x128xbf16, #tpu.memory_space<vmem>>, vector<1x8x8x128xbf16>
    %39 = vector.shape_cast %38 : vector<1x8x8x128xbf16> to vector<8x8x128xbf16>
    %40 = vector.shape_cast %37 : vector<8x8x128xbf16> to vector<1x8x8x128xbf16>
    tpu.vector_store %arg4[%c0_48, %c0_49, %c0_50, %c0_51], %40 {strides = array<i32>} : memref<1x8x8x128xbf16, #tpu.memory_space<vmem>>, vector<1x8x8x128xbf16>,
    %cst_52 = arith.constant dense<0.000000e+00> : vector<128xf32>
    %41 = vector.multi_reduction <add>, %35, %cst_52 [0] : vector<64x128xf32> to vector<128xf32>
    %42 = vector.shape_cast %41 : vector<128xf32> to vector<1x128xf32>
    %43 = arith.addf %0, %42 : vector<1x128xf32>
    %44 = arith.mulf %35, %35 : vector<64x128xf32>
    %cst_53 = arith.constant dense<0.000000e+00> : vector<128xf32>
    %45 = vector.multi_reduction <add>, %44, %cst_53 [0] : vector<64x128xf32> to vector<128xf32>
    %46 = vector.shape_cast %45 : vector<128xf32> to vector<1x128xf32>
    %47 = arith.addf %1, %46 : vector<1x128xf32>
    %c0_54 = arith.constant 0 : index
    %c0_55 = arith.constant 0 : index
    %48 = vector.load %arg3[%c0_54, %c0_55] : memref<16x128xbf16, #tpu.memory_space<vmem>>, vector<16x128xbf16>
    %cst_56 = arith.constant dense<0.000000e+00> : vector<64x128xf32>
    %49 = tpu.matmul %18, %48, %cst_56 {dimension_numbers = #tpu.dot_dimension_numbers<[1], [0], [0], [1], [0, 0, 1, 1], [], []>} : vector<64x16xbf16>, vector<16x128xbf16>, vector<64x128xf32> -> vector<64x128xf32>
    %50 = vector.shape_cast %49 : vector<64x128xf32> to vector<8x8x128xf32>
    %51 = arith.truncf %50 : vector<8x8x128xf32> to vector<8x8x128xbf16>
    %c0_57 = arith.constant 0 : index
    %c0_58 = arith.constant 0 : index
    %c0_59 = arith.constant 0 : index
    %c0_60 = arith.constant 0 : index
    %52 = vector.load %arg6[%c0_57, %c0_58, %c0_59, %c0_60] : memref<1x8x8x128xbf16, #tpu.memory_space<vmem>>, vector<1x8x8x128xbf16>
    %53 = vector.shape_cast %52 : vector<1x8x8x128xbf16> to vector<8x8x128xbf16>
    %54 = vector.shape_cast %51 : vector<8x8x128xbf16> to vector<1x8x8x128xbf16>
    tpu.vector_store %arg6[%c0_57, %c0_58, %c0_59, %c0_60], %54 {strides = array<i32>} : memref<1x8x8x128xbf16, #tpu.memory_space<vmem>>, vector<1x8x8x128xbf16>,
    %cst_61 = arith.constant dense<0.000000e+00> : vector<128xf32>
    %55 = vector.multi_reduction <add>, %49, %cst_61 [0] : vector<64x128xf32> to vector<128xf32>
    %56 = vector.shape_cast %55 : vector<128xf32> to vector<1x128xf32>
    %57 = arith.addf %2, %56 : vector<1x128xf32>
    %58 = arith.mulf %49, %49 : vector<64x128xf32>
    %cst_62 = arith.constant dense<0.000000e+00> : vector<128xf32>
    %59 = vector.multi_reduction <add>, %58, %cst_62 [0] : vector<64x128xf32> to vector<128xf32>
    %60 = vector.shape_cast %59 : vector<128xf32> to vector<1x128xf32>
    %61 = arith.addf %3, %60 : vector<1x128xf32>
    %c0_63 = arith.constant 0 : index
    %c0_64 = arith.constant 0 : index
    %c0_65 = arith.constant 0 : index
    %62 = vector.load %arg5[%c0_63, %c0_64, %c0_65] : memref<1x2x128xf32, #tpu.memory_space<vmem>>, vector<1x1x128xf32>
    %63 = vector.shape_cast %62 : vector<1x1x128xf32> to vector<1x128xf32>
    %64 = vector.shape_cast %43 : vector<1x128xf32> to vector<1x1x128xf32>
    tpu.vector_store %arg5[%c0_63, %c0_64, %c0_65], %64 {strides = array<i32>} : memref<1x2x128xf32, #tpu.memory_space<vmem>>, vector<1x1x128xf32>,
    %c0_66 = arith.constant 0 : index
    %c1_67 = arith.constant 1 : index
    %c0_68 = arith.constant 0 : index
    %65 = vector.load %arg5[%c0_66, %c1_67, %c0_68] : memref<1x2x128xf32, #tpu.memory_space<vmem>>, vector<1x1x128xf32>
    %66 = vector.shape_cast %65 : vector<1x1x128xf32> to vector<1x128xf32>
    %67 = vector.shape_cast %47 : vector<1x128xf32> to vector<1x1x128xf32>
    tpu.vector_store %arg5[%c0_66, %c1_67, %c0_68], %67 {strides = array<i32>} : memref<1x2x128xf32, #tpu.memory_space<vmem>>, vector<1x1x128xf32>,
    %c0_69 = arith.constant 0 : index
    %c0_70 = arith.constant 0 : index
    %c0_71 = arith.constant 0 : index
    %68 = vector.load %arg7[%c0_69, %c0_70, %c0_71] : memref<1x2x128xf32, #tpu.memory_space<vmem>>, vector<1x1x128xf32>
    %69 = vector.shape_cast %68 : vector<1x1x128xf32> to vector<1x128xf32>
    %70 = vector.shape_cast %57 : vector<1x128xf32> to vector<1x1x128xf32>
    tpu.vector_store %arg7[%c0_69, %c0_70, %c0_71], %70 {strides = array<i32>} : memref<1x2x128xf32, #tpu.memory_space<vmem>>, vector<1x1x128xf32>,
    %c0_72 = arith.constant 0 : index
    %c1_73 = arith.constant 1 : index
    %c0_74 = arith.constant 0 : index
    %71 = vector.load %arg7[%c0_72, %c1_73, %c0_74] : memref<1x2x128xf32, #tpu.memory_space<vmem>>, vector<1x1x128xf32>
    %72 = vector.shape_cast %71 : vector<1x1x128xf32> to vector<1x128xf32>
    %73 = vector.shape_cast %61 : vector<1x128xf32> to vector<1x1x128xf32>
    tpu.vector_store %arg7[%c0_72, %c1_73, %c0_74], %73 {strides = array<i32>} : memref<1x2x128xf32, #tpu.memory_space<vmem>>, vector<1x1x128xf32>,
    return
  }
  func.func @transform_0(%arg0: i32) -> (i32, i32, i32, i32, i32) {
    %c0_i32 = arith.constant 0 : i32
    %c0_i32_0 = arith.constant 0 : i32
    %c0_i32_1 = arith.constant 0 : i32
    %c0_i32_2 = arith.constant 0 : i32
    %c0_i32_3 = arith.constant 0 : i32
    return %arg0, %c0_i32, %c0_i32_0, %c0_i32_1, %c0_i32_2 : i32, i32, i32, i32, i32
  }
  func.func @transform_1(%arg0: i32) -> (i32, i32) {
    %c0_i32 = arith.constant 0 : i32
    %c0_i32_0 = arith.constant 0 : i32
    %c0_i32_1 = arith.constant 0 : i32
    return %c0_i32, %c0_i32_0 : i32, i32
  }
  func.func @transform_2(%arg0: i32) -> (i32, i32) {
    %c0_i32 = arith.constant 0 : i32
    %c0_i32_0 = arith.constant 0 : i32
    %c0_i32_1 = arith.constant 0 : i32
    return %c0_i32, %c0_i32_0 : i32, i32
  }
  func.func @transform_3(%arg0: i32) -> (i32, i32, i32, i32) {
    %c0_i32 = arith.constant 0 : i32
    %c0_i32_0 = arith.constant 0 : i32
    %c0_i32_1 = arith.constant 0 : i32
    %c0_i32_2 = arith.constant 0 : i32
    return %arg0, %c0_i32, %c0_i32_0, %c0_i32_1 : i32, i32, i32, i32
  }
  func.func @transform_4(%arg0: i32) -> (i32, i32, i32) {
    %c0_i32 = arith.constant 0 : i32
    %c0_i32_0 = arith.constant 0 : i32
    %c0_i32_1 = arith.constant 0 : i32
    return %arg0, %c0_i32, %c0_i32_0 : i32, i32, i32
  }
  func.func @transform_5(%arg0: i32) -> (i32, i32, i32, i32) {
    %c0_i32 = arith.constant 0 : i32
    %c0_i32_0 = arith.constant 0 : i32
    %c0_i32_1 = arith.constant 0 : i32
    %c0_i32_2 = arith.constant 0 : i32
    return %arg0, %c0_i32, %c0_i32_0, %c0_i32_1 : i32, i32, i32, i32
  }
  func.func @transform_6(%arg0: i32) -> (i32, i32, i32) {
    %c0_i32 = arith.constant 0 : i32
    %c0_i32_0 = arith.constant 0 : i32
    %c0_i32_1 = arith.constant 0 : i32
    return %arg0, %c0_i32, %c0_i32_0 : i32, i32, i32
  }
}

</mosaic_0001>

<bundles_post_ra>
// kernel: tpu_custom_call.1
= control target key start
LH: loop header
LB: loop body
LE: loop exit
PB: predicated region body
PF: predicated region fallthrough
CT: control target
= control target key end

     0   :  { %12 = vsyncpa [#allocation3], 0  ;;  %s2686_s0 = inlined_call_operand.vmem [shape: bf16[2,4,9,9,16], index: 0, kind: input, shape index: {}]   ;;  %s2687_s1 = inlined_call_operand.vmem [shape: bf16[144,128], index: 1, kind: input, shape index: {}]   ;;  %s2688_s2 = inlined_call_operand.vmem [shape: bf16[16,128], index: 2, kind: input, shape index: {}]   ;;  %s2689_s3 = inlined_call_operand.hbm [shape: bf16[2,8,8,128], index: 3, kind: output, shape index: {0}]   ;;  %s2690_s4 = inlined_call_operand.hbm [shape: f32[2,2,128], index: 4, kind: output, shape index: {1}]   ;;  %s2691_s5 = inlined_call_operand.hbm [shape: bf16[2,8,8,128], index: 5, kind: output, shape index: {2}]   ;;  %s2692_s6 = inlined_call_operand.hbm [shape: f32[2,2,128], index: 6, kind: output, shape index: {3}]  }
   0x1   :  { %14 = vsyncpa [#allocation3 + $0x1], 0 }
   0x2   :  { %15 = vsyncpa [#allocation5], 0 }
   0x3   :  { %17 = vsyncpa [#allocation5 + $0x1], 0 }
   0x4   :  { %18 = vsyncpa [#allocation8], 0 }
   0x5   :  { %20 = vsyncpa [#allocation8 + $0x1], 0  ;;  %s2060_s21 = smov 0   ;;  %s2062_s22 = smov 0  }
   0x6   :  { %s2064_s23 = smov 0   ;;  %s2066_s24 = smov 0  }
   0x7 LB: > { %s2081_s25 = sadd.s32 4294967295, %s2010_s24   ;;  %s2693_s26 = sadd.s32 4294967294, %s2010_s24   ;;  %s2010_s24 = sphi %s2066_s24, %s2708_s24   ;;  %s2006_s23 = sphi %s2064_s23, %s2707_s23   ;;  %s2002_s22 = sphi %s2062_s22, %s2706_s22   ;;  %s1998_s21 = sphi %s2060_s21, %s2705_s21  }
   0x8   : > { %s2085_s27 = sadd.s32 1, %s2010_s24   ;;  %s101_s28 = sadd.s32 1, %s2006_s23 }
   0x9   : > { %s98_s29 = ssub.s32 %s2010_s24, %s2085_s27  ;;  %p111_p0 = scmp.ne.s32.totalorder %s2006_s23, %s2002_s22 }
   0xa   : > { %p99_p1 = scmp.eq.s32.totalorder %s98_s29, 0  ;;  %p112_p2 = scmp.eq.s32.totalorder %s2081_s25, 1 }
   0xb   : > { %p117_p3 = scmp.ne.s32.totalorder %s2002_s22, %s1998_s21  ;;  %p118_p4 = scmp.eq.s32.totalorder %s2693_s26, 1 }
   0xc   : > { %s2098_s30 = scalar_select %p99_p1, %s2006_s23, %s101_s28  }
   0xd   : > { %p2100_p5 = por %p112_p2, %p111_p0  ;;  %p2104_p6 = por %p118_p4, %p117_p3 }
   0xe   : > { %p1549_p7 = scmp.ge.s32.totalorder %s2010_s24, 1  ;;  %p228_p8 = scmp.lt.s32.totalorder %s2010_s24, 3 }
  0x10   : > { %p229_p9 = pnand %p1549_p7, %p228_p8 }
  0x11   : > { %p273_p10 = scmp.lt.s32.totalorder (!%p229_p9), %s2081_s25, 1  ;;  %v1842_v0 = vld [vmem:[%s2687_s1] sm:$0xff] (!%p229_p9)   ;;  %v2012_v1 = vmov (!%p229_p9), 0   ;;  %v1843_v2 = vld [vmem:[%s2687_s1 + $0x8] sm:$0xff] (!%p229_p9)   ;;  %v1844_v3 = vld [vmem:[%s2687_s1 + $0x10] sm:$0xff] (!%p229_p9)   ;;  %s2013_s20 = smov (!%p229_p9), 16  }
  0x12   : > { %232 = sbr.rel (%p229_p9) target bundleno = 514 (0x202), region = 32  ;;  %1062 = vmatprep.subr.bf16.mxu0 (!%p229_p9), %v2012_v1  ;;  %1740 = vmatprep.subr.bf16.mxu1 (!%p229_p9), %v2012_v1  ;;  %vm304_vm0 = vsmask.f32 (!%p229_p9), 3328  ;;  %vm305_vm1 = vsmask.f32 (!%p229_p9), 7440  ;;  %s2014_s28 = smov (!%p229_p9), 48  }
  0x13   : > { %1063 = vmatpush1.bf16.msra.mxu0 (!%p229_p9), %v1842_v0  ;;  %1749 = vmatpush1.bf16.msra.mxu1 (!%p229_p9), %v1842_v0  ;;  %v1846_v16 = vld [vmem:[%s2687_s1 + $0x18] sm:$0xff] (!%p229_p9)   ;;  %v1848_v25 = vld [vmem:[%s2687_s1 + $0x20] sm:$0xff] (!%p229_p9)   ;;  %s2695_s12 = smov (!%p229_p9), 64   ;;  %vm2191_vm2 = vmor (!%p229_p9), %vm304_vm0, %vm305_vm1  ;;  %s2016_s18 = smov (!%p229_p9), 32   ;;  %vm907_vm3 = vcmask (!%p229_p9), 130048   ;;  %vm920_vm4 = vcmask (!%p229_p9), 261120  }
  0x14   : > { %1064 = vmatprep.subr.bf16.mxu0 (!%p229_p9), %v2012_v1  ;;  %1741 = vmatprep.subr.bf16.mxu1 (!%p229_p9), %v2012_v1  ;;  %s2018_s13 = smov (!%p229_p9), 96   ;;  %s2019_s16 = smov (!%p229_p9), 112   ;;  %vm929_vm5 = vcmask (!%p229_p9), 392192   ;;  %vm938_vm6 = vcmask (!%p229_p9), 523264   ;;  %vm947_vm7 = vcmask (!%p229_p9), 654336   ;;  %vm956_vm8 = vcmask (!%p229_p9), 785408  }
  0x15   : > { %vm965_vm9 = vcmask (!%p229_p9), 916480   ;;  %s2694_s29 = sshll.u32 (!%p229_p9), %s2081_s25, 9 }
  0x17   : > { %1065 = vmatpush1.bf16.msra.mxu0 (!%p229_p9), %v1843_v2  ;;  %1750 = vmatpush1.bf16.msra.mxu1 (!%p229_p9), %v1843_v2 }
  0x18   : > { %1066 = vmatprep.subr.bf16.mxu0 (!%p229_p9), %v2012_v1  ;;  %1742 = vmatprep.subr.bf16.mxu1 (!%p229_p9), %v2012_v1 }
  0x19   : > { %s274_s11 = scalar_select %p273_p10, %s2081_s25, 1 }
  0x1b   : > { %s1758_s14 = smul.u32 288, %s274_s11  ;;  %1067 = vmatpush1.bf16.msra.mxu0 %v1844_v3  ;;  %1751 = vmatpush1.bf16.msra.mxu1 %v1844_v3  ;;  %s2017_s11 = smov 80  }
  0x1c   : > { %1068 = vmatprep.subr.bf16.mxu0 %v2012_v1  ;;  %1743 = vmatprep.subr.bf16.mxu1 %v2012_v1 }
  0x1d   : > { %s2125_s17 = scalar_lea.vmem %s2686_s0, %s1758_s14 }
  0x1e   : > { %v1822_v4 = vld [vmem:[%s2125_s17 + $0x48] ss:$8 sps:$4 sm:$0xff]   ;;  %v1569_v5 = vld [vmem:[%s2125_s17 + $0xc0] sm:$0xf]  ;;  %v1564_v21 = vld [vmem:[%s2125_s17 + $0x98] sm:$0xf] }
  0x1f   : > { %v1570_v6 = vld [vmem:[%s2125_s17 + $0xc8] sm:$0xf]  ;;  %735 = vrot.lane.b32.xlu0 %v1822_v4, %s2013_s20  ;;  %v530_v10 = vshrl.u32 %v1569_v5, 16  ;;  %v533_v11 = vshll.u32 %v1569_v5, 16  ;;  %v1824_v12 = vld [vmem:[%s2125_s17 + $0x78] ss:$8 sps:$4 sm:$0xff]   ;;  %1069 = vmatpush1.bf16.msra.mxu0 %v1846_v16 }
  0x20   : > { %v544_v7 = vshrl.u32 %v1570_v6, 16  ;;  %v547_v8 = vshll.u32 %v1570_v6, 16  ;;  %v1626_v9 = vcombine.low %v1569_v5, %v1570_v6  ;;  %v2142_v18 = vld [vmem:[%s2125_s17 + $0x108] ss:$8 sps:$4 sm:$0xff]   ;;  %v2149_v24 = vld [vmem:[%s2125_s17] sm:$0xf]  ;;  %1752 = vmatpush1.bf16.msra.mxu1 %v1846_v16  ;;  %1070 = vmatprep.subr.bf16.mxu0 %v2012_v1 }
  0x21   : > { %v532_v15 = vrot.slane %v530_v10, 4  ;;  %v535_v17 = vrot.slane %v533_v11, 5  ;;  %v1563_v19 = vld [vmem:[%s2125_s17 + $0x90] sm:$0xf]  ;;  %v460_v27 = vshrl.u32 %v1564_v21, 16  ;;  %v463_v28 = vshll.u32 %v1564_v21, 16  ;;  %1744 = vmatprep.subr.bf16.mxu1 %v2012_v1 }
  0x22   : > { %v546_v13 = vrot.slane %v544_v7, 4  ;;  %v549_v14 = vrot.slane %v547_v8, 5  ;;  %789 = vrot.lane.b32.xlu1 %v1626_v9, %s2014_s28  ;;  %v446_v22 = vshrl.u32 %v1563_v19, 16  ;;  %v449_v23 = vshll.u32 %v1563_v19, 16  ;;  %v2156_v30 = vld [vmem:[%s2125_s17 + $0x8] sm:$0xf] }
  0x23   : > { %741 = vrot.lane.b32.xlu0 %v1824_v12, %s2013_s20  ;;  %v536_v26 = vor.u32 %v535_v17, %v532_v15  ;;  %v1623_v29 = vcombine.low %v1563_v19, %v1564_v21  ;;  %v296_v31 = vld [vmem:[%s2125_s17 + $0x4] sm:$0x1]  ;;  %v297_v35 = vld [vmem:[%s2125_s17 + $0xc] sm:$0x1]  ;;  %v308_v36 = vshrl.u32 %v2149_v24, 16  ;;  %v462_v38 = vrot.slane %v460_v27, 4  ;;  %1071 = vmatpush1.bf16.msra.mxu0 %v1848_v25 }
  0x24   : > { %v550_v20 = vor.u32 %v549_v14, %v546_v13  ;;  %v448_v33 = vrot.slane %v446_v22, 4  ;;  %v451_v34 = vrot.slane %v449_v23, 5  ;;  %v465_v39 = vrot.slane %v463_v28, 5  ;;  %v2174_v47 = vld [vmem:[%s2125_s17 + $0xd8] ss:$8 sps:$4 sm:$0xff]   ;;  %1753 = vmatpush1.bf16.msra.mxu1 %v1848_v25  ;;  %1072 = vmatprep.subr.bf16.mxu0 %v2012_v1  ;;  %v1849_v5 = vld [vmem:[%s2687_s1 + $0x28] sm:$0xff]  }
  0x25   : > { %v2165_v37 = vrot.slane %v536_v26, 4  ;;  %v311_v40 = vshll.u32 %v2149_v24, 16  ;;  %v310_v41 = vrot.slane %v308_v36, 4  ;;  %v317_v42 = vshll.u32 %v296_v31, 16  ;;  %v2177_v48 = vld [vmem:[%s2125_s17 + $0x30] sm:$0xf]  ;;  %1745 = vmatprep.subr.bf16.mxu1 %v2012_v1 }
  0x26   : > { %v2159_v32 = vrot.slane %v550_v20, 4  ;;  %817 = vrot.lane.b32.xlu1 %v2142_v18, %s2695_s12  ;;  %v322_v43 = vshrl.u32 %v2156_v30, 16  ;;  %v325_v44 = vshll.u32 %v2156_v30, 16  ;;  %v331_v46 = vshll.u32 %v297_v35, 16  ;;  %v2180_v54 = vld [vmem:[%s2125_s17 + $0x38] sm:$0xf] }
  0x27   : > { %783 = vrot.lane.b32.xlu0 %v1623_v29, %s2014_s28  ;;  %v313_v45 = vrot.slane %v311_v40, 5  ;;  %v452_v49 = vor.u32 %v451_v34, %v448_v33  ;;  %v466_v50 = vor.u32 %v465_v39, %v462_v38  ;;  %v319_v51 = vrot.slane %v317_v42, 5  ;;  %v302_v58 = vld [vmem:[%s2125_s17 + $0x34] sm:$0x1]  ;;  %v303_v59 = vld [vmem:[%s2125_s17 + $0x3c] sm:$0x1]  ;;  %1073 = vmatpush1.bf16.msra.mxu0 %v1849_v5 }
  0x28   : > { %v324_v52 = vrot.slane %v322_v43, 4  ;;  %v327_v53 = vrot.slane %v325_v44, 5  ;;  %v392_v55 = vshrl.u32 %v2177_v48, 16  ;;  %v333_v57 = vrot.slane %v331_v46, 5  ;;  %v1579_v4 = vld [vmem:[%s2125_s17 + $0x94] sm:$0x1]  ;;  %1754 = vmatpush1.bf16.msra.mxu1 %v1849_v5  ;;  %1074 = vmatprep.subr.bf16.mxu0 %v2012_v1 }
  0x29   : > { %v314_v56 = vor.u32 %v313_v45, %v310_v41  ;;  %v395_v60 = vshll.u32 %v2177_v48, 16  ;;  %v1611_v61 = vcombine.low %v2149_v24, %v2156_v30  ;;  %v401_v2 = vshll.u32 %v302_v58, 16  ;;  %v1580_v10 = vld [vmem:[%s2125_s17 + $0x9c] sm:$0x1]  ;;  %v1585_v15 = vld [vmem:[%s2125_s17 + $0xc4] sm:$0x1]  ;;  %1746 = vmatprep.subr.bf16.mxu1 %v2012_v1 }
  0x2a   : > { %v328_v63 = vor.u32 %v327_v53, %v324_v52  ;;  %v394_v0 = vrot.slane %v392_v55, 4  ;;  %v406_v3 = vshrl.u32 %v2180_v54, 16  ;;  %v409_v8 = vshll.u32 %v2180_v54, 16  ;;  %v1586_v21 = vld [vmem:[%s2125_s17 + $0xcc] sm:$0x1]  ;;  %v1850_v27 = vld [vmem:[%s2687_s1 + $0x30] sm:$0xff]  }
  0x2b   : > { %811 = vrot.lane.b32.xlu0 %v2174_v47, %s2695_s12  ;;  %v315_v6 = vrot.slane %v314_v56, 4  ;;  %v397_v7 = vrot.slane %v395_v60, 5  ;;  %v415_v9 = vshll.u32 %v303_v59, 16  ;;  %v403_v12 = vrot.slane %v401_v2, 5  ;;  %v1587_v34 = vld [vmem:[%s2125_s17 + $0x8] sm:$0xf]  ;;  %1075 = vmatpush1.bf16.msra.mxu0 %v1850_v27 }
  0x2c   : > { %v329_v11 = vrot.slane %v328_v63, 4  ;;  %v408_v13 = vrot.slane %v406_v3, 4  ;;  %v453_v14 = vrot.slane %v452_v49, 4  ;;  %v411_v19 = vrot.slane %v409_v8, 5  ;;  %v1588_v39 = vld [vmem:[%s2125_s17 + $0x10] sm:$0xf]  ;;  %1755 = vmatpush1.bf16.msra.mxu1 %v1850_v27  ;;  %1076 = vmatprep.subr.bf16.mxu0 %v2012_v1 }
  0x2d   : > { %v320_v16 = vsel %vm2191_vm2, %v315_v6, %v319_v51  ;;  %v398_v17 = vor.u32 %v397_v7, %v394_v0  ;;  %v417_v20 = vrot.slane %v415_v9, 5  ;;  %v455_v23 = vshll.u32 %v1579_v4, 16  ;;  %v1851_v45 = vld [vmem:[%s2687_s1 + $0x38] sm:$0xff]   ;;  %1747 = vmatprep.subr.bf16.mxu1 %v2012_v1  ;;  %v2239_v56 = vld [vmem:[%s2125_s17 + $0x40] sm:$0xf] }
  0x2e   : > { %v334_v22 = vsel %vm2191_vm2, %v329_v11, %v333_v57  ;;  %v467_v25 = vrot.slane %v466_v50, 4  ;;  %v469_v26 = vshll.u32 %v1580_v10, 16  ;;  %v412_v31 = vor.u32 %v411_v19, %v408_v13  ;;  %v2229_v51 = vld [vmem:[%s2125_s17 + $0x38] sm:$0xf]  ;;  %v1852_v57 = vld [vmem:[%s2687_s1 + $0x40] sm:$0xff]  }
  0x2f   : > { %v1619_v28 = vcombine.low %v320_v16, %v334_v22  ;;  %v399_v29 = vrot.slane %v398_v17, 4  ;;  %v539_v33 = vshll.u32 %v1585_v15, 16  ;;  %v457_v35 = vrot.slane %v455_v23, 5  ;;  %1077 = vmatpush1.bf16.msra.mxu0 %v1851_v45  ;;  %v2254_v4 = vld [vmem:[%s2125_s17 + $0x10] sm:$0xf] }
  0x30   : > { %v471_v36 = vrot.slane %v469_v26, 5  ;;  %v553_v38 = vshll.u32 %v1586_v21, 16  ;;  %v584_v40 = vshrl.u32 %v1587_v34, 16  ;;  %v413_v42 = vrot.slane %v412_v31, 4  ;;  %1756 = vmatpush1.bf16.msra.mxu1 %v1851_v45  ;;  %v2263_v8 = vld [vmem:[%s2125_s17 + $0x18] sm:$0xf]  ;;  %1078 = vmatprep.subr.bf16.mxu0 %v2012_v1 }
  0x31   : > { %755 = vrot.lane.b32.xlu1 %v1619_v28, %s2016_s18  ;;  %v404_v41 = vsel %vm2191_vm2, %v399_v29, %v403_v12  ;;  %v541_v43 = vrot.slane %v539_v33, 5  ;;  %v587_v44 = vshll.u32 %v1587_v34, 16  ;;  %v458_v46 = vsel %vm2191_vm2, %v453_v14, %v457_v35  ;;  %v1830_v11 = vld [vmem:[%s2125_s17 + $0x50] ss:$8 sps:$4 sm:$0xff]   ;;  %v298_v12 = vld [vmem:[%s2125_s17 + $0x14] sm:$0x1]  ;;  %1748 = vmatprep.subr.bf16.mxu1 %v2012_v1 }
  0x32   : > { %v472_v49 = vsel %vm2191_vm2, %v467_v25, %v471_v36  ;;  %v555_v50 = vrot.slane %v553_v38, 5  ;;  %v418_v52 = vsel %vm2191_vm2, %v413_v42, %v417_v20  ;;  %v598_v60 = vshrl.u32 %v1588_v39, 16  ;;  %v299_v13 = vld [vmem:[%s2125_s17 + $0x1c] sm:$0x1]  ;;  %v2281_v20 = vld [vmem:[%s2125_s17 + $0xa0] sm:$0xf] }
  0x33   : > { %v1631_v53 = vcombine.low %v458_v46, %v472_v49  ;;  %v542_v55 = vsel %vm2191_vm2, %v2165_v37, %v541_v43  ;;  %v1622_v58 = vcombine.low %v404_v41, %v418_v52  ;;  %v601_v63 = vshll.u32 %v1588_v39, 16  ;;  %1079 = vmatpush1.bf16.msra.mxu0 %v1852_v57  ;;  %v1566_v25 = vld [vmem:[%s2125_s17 + $0xa8] sm:$0xf]  ;;  %v1832_v38 = vld [vmem:[%s2125_s17 + $0x58] ss:$8 sps:$4 sm:$0xff]  }
  0x34   : > { %v556_v59 = vsel %vm2191_vm2, %v2159_v32, %v555_v50  ;;  %v2248_v37 = vrot.slane %v584_v40, 4  ;;  %v2250_v0 = vrot.slane %v587_v44, 5  ;;  %v1635_v2 = vcombine.low %v1587_v34, %v1588_v39  ;;  %1757 = vmatpush1.bf16.msra.mxu1 %v1852_v57  ;;  %v1831_v36 = vld [vmem:[%s2125_s17 + $0x80] ss:$8 sps:$4 sm:$0xff]   ;;  %v1581_v50 = vld [vmem:[%s2125_s17 + $0xa4] sm:$0x1] }
  0x35   : > { %831 = vrot.lane.b32.xlu0 %v1631_v53, %s2017_s11  ;;  %v668_v3 = vshrl.u32 %v2229_v51, 16  ;;  %761 = vrot.lane.b32.xlu1 %v1622_v58, %s2016_s18  ;;  %v1634_v32 = vcombine.low %v542_v55, %v556_v59  ;;  %v2257_v5 = vrot.slane %v598_v60, 4  ;;  %v2259_v6 = vrot.slane %v601_v63, 5  ;;  %v2297_v43 = vld [vmem:[%s2688_s2] sm:$0xff]   ;;  %v2305_v58 = vld [vmem:[%s2125_s17 + $0x18] sm:$0xf] }
  0x36   : > { %v671_v7 = vshll.u32 %v2229_v51, 16  ;;  %v682_v9 = vshrl.u32 %v2239_v56, 16  ;;  %v685_v10 = vshll.u32 %v2239_v56, 16  ;;  %v1614_v14 = vcombine.low %v2177_v48, %v2180_v54  ;;  %1730 = vmatprep.subr.bf16.mxu1 %v2297_v43 }
  0x37   : > { %v2274_v15 = vrot.slane %v668_v3, 4  ;;  %v1638_v16 = vcombine.low %v2229_v51, %v2239_v56  ;;  %v336_v17 = vshrl.u32 %v2254_v4, 16  ;;  %v339_v19 = vshll.u32 %v2254_v4, 16  ;;  %v1582_v51 = vld [vmem:[%s2125_s17 + $0xac] sm:$0x1] }
  0x38   : > { %v345_v21 = vshll.u32 %v298_v12, 16  ;;  %v350_v1 = vshrl.u32 %v2263_v8, 16  ;;  %v353_v22 = vshll.u32 %v2263_v8, 16  ;;  %v359_v23 = vshll.u32 %v299_v13, 16 }
  0x39   : > { %859 = vrot.lane.b32.xlu0 %v1635_v2, %s2018_s13  ;;  %837 = vrot.lane.b32.xlu1 %v1634_v32, %s2017_s11  ;;  %v338_v26 = vrot.slane %v336_v17, 4  ;;  %v341_v27 = vrot.slane %v339_v19, 5  ;;  %v474_v28 = vshrl.u32 %v2281_v20, 16  ;;  %v477_v29 = vshll.u32 %v2281_v20, 16  ;;  %v2316_v17 = vld [vmem:[%s2125_s17 + $0x20] sm:$0xf] }
  0x3a   : > { %v2290_v31 = vrot.slane %v671_v7, 5  ;;  %v347_v33 = vrot.slane %v345_v21, 5  ;;  %v352_v34 = vrot.slane %v350_v1, 4  ;;  %v355_v35 = vrot.slane %v353_v22, 5 }
  0x3b   : > { %v342_v39 = vor.u32 %v341_v27, %v338_v26  ;;  %v476_v40 = vrot.slane %v474_v28, 4  ;;  %v479_v41 = vrot.slane %v477_v29, 5  ;;  %v488_v42 = vshrl.u32 %v1566_v25, 16  ;;  %v2328_v27 = vld [vmem:[%s2125_s17 + $0x20] sm:$0xf] }
  0x3c   : > { %v356_v44 = vor.u32 %v355_v35, %v352_v34  ;;  %v361_v45 = vrot.slane %v359_v23, 5  ;;  %v491_v46 = vshll.u32 %v1566_v25, 16  ;;  %v1624_v49 = vcombine.low %v2281_v20, %v1566_v25  ;;  %v300_v34 = vld [vmem:[%s2125_s17 + $0x24] sm:$0x1]  ;;  %v2341_v35 = vld [vmem:[%s2125_s17 + $0xe8] ss:$8 sps:$4 sm:$0xff]  }
  0x3d   : > { %887 = vrot.lane.b32.xlu0 %v1830_v11, %s2019_s16  ;;  %865 = vrot.lane.b32.xlu1 %v1638_v16, %s2018_s13  ;;  %v343_v52 = vrot.slane %v342_v39, 4  ;;  %v490_v53 = vrot.slane %v488_v42, 4  ;;  %v480_v55 = vor.u32 %v479_v41, %v476_v40  ;;  %v483_v57 = vshll.u32 %v1581_v50, 16  ;;  %v1836_v50 = vld [vmem:[%s2125_s17 + $0x60] ss:$8 sps:$4 sm:$0xff]  }
  0x3e   : > { %v357_v59 = vrot.slane %v356_v44, 4  ;;  %v493_v60 = vrot.slane %v491_v46, 5  ;;  %v497_v63 = vshll.u32 %v1582_v51, 16  ;;  %v612_v2 = vshrl.u32 %v2305_v58, 16 }
  0x3f   : > { %v348_v3 = vsel %vm2191_vm2, %v343_v52, %v347_v33  ;;  %v481_v32 = vrot.slane %v480_v55, 4  ;;  %v485_v7 = vrot.slane %v483_v57, 5  ;;  %v615_v11 = vshll.u32 %v2305_v58, 16  ;;  %v2335_v33 = vld [vmem:[%s2125_s17 + $0x28] sm:$0xf] }
  0x40   : > { %v362_v12 = vsel %vm2191_vm2, %v357_v59, %v361_v45  ;;  %v494_v13 = vor.u32 %v493_v60, %v490_v53  ;;  %v499_v16 = vrot.slane %v497_v63, 5  ;;  %v614_v19 = vrot.slane %v612_v2, 4  ;;  %v2354_v45 = vld [vmem:[%s2125_s17 + $0xb0] sm:$0xf]  ;;  %v2361_v53 = vld [vmem:[%s2125_s17 + $0xb8] sm:$0xf] }
  0x41   : > { %737 = vrot.lane.b32.xlu0 %v1832_v38, %s2013_s20  ;;  %893 = vrot.lane.b32.xlu1 %v1831_v36, %s2019_s16  ;;  %v1620_v20 = vcombine.low %v348_v3, %v362_v12  ;;  %v617_v21 = vrot.slane %v615_v11, 5  ;;  %v626_v1 = vshrl.u32 %v2316_v17, 16  ;;  %v2322_v22 = vrot.slane %v682_v9, 4 }
  0x42   : > { %v486_v23 = vsel %vm2191_vm2, %v481_v32, %v485_v7  ;;  %v495_v25 = vrot.slane %v494_v13, 4  ;;  %v629_v26 = vshll.u32 %v2316_v17, 16  ;;  %v2332_v28 = vrot.slane %v685_v10, 5  ;;  %v301_v10 = vld [vmem:[%s2125_s17 + $0x2c] sm:$0x1] }
  0x43   : > { %v618_v29 = vor.u32 %v617_v21, %v614_v19  ;;  %v364_v9 = vshrl.u32 %v2328_v27, 16  ;;  %v1636_v56 = vcombine.low %v2305_v58, %v2316_v17  ;;  %v367_v38 = vshll.u32 %v2328_v27, 16  ;;  %v1583_v19 = vld [vmem:[%s2125_s17 + $0xb4] sm:$0x1] }
  0x44   : > { %v500_v36 = vsel %vm2191_vm2, %v495_v25, %v499_v16  ;;  %v373_v39 = vshll.u32 %v300_v34, 16  ;;  %v2350_v41 = vrot.slane %v626_v1, 4  ;;  %v378_v44 = vshrl.u32 %v2335_v33, 16 }
  0x45   : > { %785 = vrot.lane.b32.xlu0 %v1624_v49, %s2014_s28  ;;  %757 = vrot.lane.b32.xlu1 %v1620_v20, %s2016_s18  ;;  %v1632_v40 = vcombine.low %v486_v23, %v500_v36  ;;  %v366_v42 = vrot.slane %v364_v9, 4  ;;  %v2356_v46 = vrot.slane %v618_v29, 4  ;;  %v631_v49 = vrot.slane %v629_v26, 5  ;;  %v1584_v20 = vld [vmem:[%s2125_s17 + $0xbc] sm:$0x1] }
  0x46   : > { %v369_v51 = vrot.slane %v367_v38, 5  ;;  %v381_v52 = vshll.u32 %v2335_v33, 16  ;;  %v380_v55 = vrot.slane %v378_v44, 4  ;;  %v387_v57 = vshll.u32 %v301_v10, 16  ;;  %v2373_v26 = vld [vmem:[%s2125_s17 + $0x28] sm:$0xf] }
  0x47   : > { %v502_v58 = vshrl.u32 %v2354_v45, 16  ;;  %v505_v59 = vshll.u32 %v2354_v45, 16  ;;  %v375_v63 = vrot.slane %v373_v39, 5  ;;  %v516_v3 = vshrl.u32 %v2361_v53, 16  ;;  %v1837_v29 = vld [vmem:[%s2125_s17 + $0x68] ss:$8 sps:$4 sm:$0xff]  }
  0x48   : > { %v370_v60 = vor.u32 %v369_v51, %v366_v42  ;;  %v383_v2 = vrot.slane %v381_v52, 5  ;;  %v389_v32 = vrot.slane %v387_v57, 5  ;;  %v519_v12 = vshll.u32 %v2361_v53, 16  ;;  %v1592_v44 = vld [vmem:[%s2125_s17 + $0x30] sm:$0xf] }
  0x49   : > { %833 = vrot.lane.b32.xlu0 %v1632_v40, %s2017_s11  ;;  %813 = vrot.lane.b32.xlu1 %v2341_v35, %s2695_s12  ;;  %v504_v7 = vrot.slane %v502_v58, 4  ;;  %v507_v11 = vrot.slane %v505_v59, 5  ;;  %v518_v17 = vrot.slane %v516_v3, 4  ;;  %v511_v23 = vshll.u32 %v1583_v19, 16  ;;  %v1609_v19 = vld [vmem:[%s2125_s17 + $0x3c] sm:$0x1] }
  0x4a   : > { %v371_v13 = vrot.slane %v370_v60, 4  ;;  %v384_v16 = vor.u32 %v383_v2, %v380_v55  ;;  %v521_v21 = vrot.slane %v519_v12, 5  ;;  %v525_v25 = vshll.u32 %v1584_v20, 16  ;;  %v1610_v20 = vld [vmem:[%s2125_s17 + $0x44] sm:$0x1] }
  0x4b   : > { %v508_v1 = vor.u32 %v507_v11, %v504_v7  ;;  %v640_v36 = vshrl.u32 %v2373_v26, 16  ;;  %v643_v10 = vshll.u32 %v2373_v26, 16  ;;  %v632_v38 = vor.u32 %v631_v49, %v2350_v41  ;;  %v1604_v11 = vld [vmem:[%s2125_s17 + $0x14] sm:$0x1] }
  0x4c   : > { %v376_v34 = vsel %vm2191_vm2, %v371_v13, %v375_v63  ;;  %v385_v9 = vrot.slane %v384_v16, 4  ;;  %v513_v40 = vrot.slane %v511_v23, 5  ;;  %v522_v42 = vor.u32 %v521_v21, %v518_v17  ;;  %v2387_v63 = vld [vmem:[%s2125_s17 + $0xf8] ss:$8 sps:$4 sm:$0xff]  }
  0x4d   : > { %889 = vrot.lane.b32.xlu0 %v1836_v50, %s2019_s16  ;;  %861 = vrot.lane.b32.xlu1 %v1636_v56, %s2018_s13  ;;  %v509_v39 = vrot.slane %v508_v1, 4  ;;  %v527_v51 = vrot.slane %v525_v25, 5  ;;  %v642_v52 = vrot.slane %v640_v36, 4  ;;  %v654_v55 = vshrl.u32 %v1592_v44, 16  ;;  %v1605_v36 = vld [vmem:[%s2125_s17 + $0x1c] sm:$0x1] }
  0x4e   : > { %v390_v50 = vsel %vm2191_vm2, %v385_v9, %v389_v32  ;;  %v523_v58 = vrot.slane %v522_v42, 4  ;;  %v645_v59 = vrot.slane %v643_v10, 5  ;;  %v657_v60 = vshll.u32 %v1592_v44, 16 }
  0x4f   : > { %v1621_v57 = vcombine.low %v376_v34, %v390_v50  ;;  %v590_v56 = vor.u32 %v2250_v0, %v2248_v37  ;;  %v604_v41 = vor.u32 %v2259_v6, %v2257_v5  ;;  %v1625_v49 = vcombine.low %v2354_v45, %v2361_v53  ;;  %v1603_v53 = vld [vmem:[%s2125_s17 + $0xc] sm:$0x1]  ;;  %v1841_v50 = vld [vmem:[%s2125_s17 + $0x70] ss:$8 sps:$4 sm:$0xff]  }
  0x50   : > { %v656_v2 = vrot.slane %v654_v55, 4  ;;  %v659_v3 = vrot.slane %v657_v60, 5  ;;  %v674_v32 = vor.u32 %v2290_v31, %v2274_v15  ;;  %v633_v7 = vrot.slane %v632_v38, 4 }
  0x51   : > { %739 = vrot.lane.b32.xlu1 %v1837_v29, %s2013_s20  ;;  %759 = vrot.lane.b32.xlu0 %v1621_v57, %s2016_s18  ;;  %v514_v37 = vsel %vm2191_vm2, %v509_v39, %v513_v40  ;;  %v528_v0 = vsel %vm2191_vm2, %v523_v58, %v527_v51  ;;  %v688_v5 = vor.u32 %v2332_v28, %v2322_v22  ;;  %v591_v12 = vrot.slane %v590_v56, 4  ;;  %v1606_v40 = vld [vmem:[%s2125_s17 + $0x24] sm:$0x1]  ;;  %v1608_v57 = vld [vmem:[%s2125_s17 + $0x34] sm:$0x1] }
  0x52   : > { %v646_v6 = vor.u32 %v645_v59, %v642_v52  ;;  %v1637_v45 = vcombine.low %v2373_v26, %v1592_v44  ;;  %v1612_v15 = vcombine.low %v2254_v4, %v2263_v8  ;;  %v1613_v31 = vcombine.low %v2328_v27, %v2335_v33  ;;  %v1607_v44 = vld [vmem:[%s2125_s17 + $0x2c] sm:$0x1]  ;;  %s2496_s17 = sand.u32 1, %s2002_s22  }
  0x53   : > { %v593_v13 = vshll.u32 %v1603_v53, 16  ;;  %v605_v16 = vrot.slane %v604_v41, 4  ;;  %v607_v17 = vshll.u32 %v1604_v11, 16  ;;  %v1633_v22 = vcombine.low %v514_v37, %v528_v0  ;;  %s1550_s20 = sshll.u32 %s2496_s17, 5  ;;  %s1551_s9 = sshll.u32 %s2496_s17, 1 }
  0x54   : > { %v660_v28 = vor.u32 %v659_v3, %v656_v2  ;;  %v675_v21 = vrot.slane %v674_v32, 4  ;;  %v677_v1 = vshll.u32 %v1609_v19, 16  ;;  %v689_v26 = vrot.slane %v688_v5, 4  ;;  %s2509_s18 = scalar_lea.vmem [#allocation6], %s1550_s20  ;;  %s1321_s14 = scalar_lea.sflag [#allocation3], %s2496_s17 }
  0x55   : > { %787 = vrot.lane.b32.xlu1 %v1625_v49, %s2014_s28  ;;  %815 = vrot.lane.b32.xlu0 %v2387_v63, %s2695_s12  ;;  %v595_v23 = vrot.slane %v593_v13, 5  ;;  %v609_v25 = vrot.slane %v607_v17, 5  ;;  %v691_v29 = vshll.u32 %v1610_v20, 16  ;;  %v647_v34 = vrot.slane %v646_v6, 4  ;;  %s2501_s28 = scalar_lea.vmem [#allocation2], %s1550_s20 }
  0x56   : > { %v679_v9 = vrot.slane %v677_v1, 5  ;;  %v621_v42 = vshll.u32 %v1605_v36, 16  ;;  %v635_v55 = vshll.u32 %v1606_v40, 16  ;;  %v649_v58 = vshll.u32 %v1607_v44, 16  ;;  %s1349_s19 = sshll.u32 %s2501_s28, 4  ;;  %s2518_s19 = int_to_ptr.vmem [resolvable:$true] %s1349_s19 }
  0x57   : > { %v596_v10 = vsel %vm2191_vm2, %v591_v12, %v595_v23  ;;  %v610_v38 = vsel %vm2191_vm2, %v605_v16, %v609_v25  ;;  %v693_v39 = vrot.slane %v691_v29, 5  ;;  %v661_v59 = vrot.slane %v660_v28, 4  ;;  %s1856_s15 = scalar_lea.vmem %s2518_s19, 512 }
  0x58   : > { %v1643_v51 = vcombine.low %v596_v10, %v610_v38  ;;  %v680_v52 = vsel %vm2191_vm2, %v675_v21, %v679_v9  ;;  %v623_v56 = vrot.slane %v621_v42, 5  ;;  %v663_v41 = vshll.u32 %v1608_v57, 16  ;;  %p1857_p11 = scmp.ne.s32.totalorder %s2518_s19, %s1856_s15 }
  0x59   : > { %835 = vrot.lane.b32.xlu1 %v1633_v22, %s2017_s11  ;;  %863 = vrot.lane.b32.xlu0 %v1637_v45, %s2018_s13  ;;  %v694_v60 = vsel %vm2191_vm2, %v689_v26, %v693_v39  ;;  %v637_v2 = vrot.slane %v635_v55, 5  ;;  %v651_v3 = vrot.slane %v649_v58, 5  ;;  %s2526_s13 = scalar_lea.hbm %s2689_s3, %s2694_s29 }
  0x5a   : > { %1656 = vmatprep.mubr.msk.bf16.mxu0 %vm907_vm3, %v1643_v51  ;;  %v1646_v49 = vcombine.low %v680_v52, %v694_v60  ;;  %v624_v32 = vsel %vm2191_vm2, %v2356_v46, %v623_v56  ;;  %v665_v37 = vrot.slane %v663_v41, 5  ;;  %p1858_p12 = pnand %p1857_p11, %p2100_p5 }
  0x5b   : > { %v638_v0 = vsel %vm2191_vm2, %v633_v7, %v637_v2  ;;  %v652_v5 = vsel %vm2191_vm2, %v647_v34, %v651_v3 }
  0x5c   : > { %1659 = vmatprep.mubr.msk.bf16.mxu1 %vm907_vm3, %v1646_v49  ;;  %v1644_v6 = vcombine.low %v624_v32, %v638_v0  ;;  %v666_v45 = vsel %vm2191_vm2, %v661_v59, %v665_v37  ;;  %p1859_p13 = pneg %p1858_p12 }
  0x5d   : > { %891 = vrot.lane.b32.xlu1 %v1841_v50, %s2019_s16  ;;  %v1645_v53 = vcombine.low %v652_v5, %v666_v45  ;;  %s2020_s16 = smov [#allocation2]  }
  0x5e   : > { %s1860_s20 = sshll.u32 %s2020_s16, 4  ;;  %s1861_s20 = int_to_ptr.vmem [resolvable:$false] %s1860_s20 }
  0x5f   : > { %s1862_s10 = scalar_lea.vmem %s1861_s20, 1024  ;;  %p1863_p0 = scmp.lt.s32.totalorder %s2518_s19, %s1861_s20 }
  0x60   : > { %p1864_p1 = scmp.lt.s32.totalorder %s1862_s10, %s1856_s15 }
  0x62   : > { %p1865_p2 = por %p1864_p1, %p1863_p0 }
  0x64   : > { %p1866_p3 = pnand %p1865_p2, %p1859_p13 }
  0x91   : > { %v736_v11 = vpop.permute.xlu0 %735 }
  0x92   : > { %v910_v7 = vsel %vm907_vm3, %v1611_v61, %v736_v11 }
  0x94   : > { %v790_v13 = vpop.permute.xlu1 %789 }
  0x95   : > { %v742_v12 = vpop.permute.xlu0 %741 }
  0x96   : > { %v919_v20 = vsel %vm907_vm3, %v1614_v14, %v742_v12 }
  0x98   : > { %v818_v16 = vpop.permute.xlu1 %817 }
  0x99   : > { %v784_v46 = vpop.permute.xlu0 %783 }
  0x9d   : > { %v812_v17 = vpop.permute.xlu0 %811 }
  0xa3   : > { %v756_v19 = vpop.permute.xlu1 %755 }
  0xa4   : > { %v922_v22 = vsel %vm920_vm4, %v910_v7, %v756_v19 }
  0xa5   : > { %v931_v21 = vsel %vm929_vm5, %v922_v22, %v784_v46 }
  0xa6   : > { %v940_v30 = vsel %vm938_vm6, %v931_v21, %v812_v17 }
  0xa7   : > { %v832_v28 = vpop.permute.xlu0 %831  ;;  %v762_v62 = vpop.permute.xlu1 %761 }
  0xa8   : > { %v928_v1 = vsel %vm920_vm4, %v919_v20, %v762_v62  ;;  %v949_v25 = vsel %vm947_vm7, %v940_v30, %v832_v28 }
  0xa9   : > { %v937_v61 = vsel %vm929_vm5, %v928_v1, %v790_v13 }
  0xaa   : > { %v946_v14 = vsel %vm938_vm6, %v937_v61, %v818_v16 }
  0xab   : > { %v860_v23 = vpop.permute.xlu0 %859  ;;  %v838_v24 = vpop.permute.xlu1 %837 }
  0xac   : > { %v958_v48 = vsel %vm956_vm8, %v949_v25, %v860_v23  ;;  %v955_v34 = vsel %vm947_vm7, %v946_v14, %v838_v24 }
  0xaf   : > { %v888_v54 = vpop.permute.xlu0 %887  ;;  %v866_v26 = vpop.permute.xlu1 %865 }
  0xb0   : > { %v967_v29 = vsel %vm965_vm9, %v958_v48, %v888_v54  ;;  %v964_v36 = vsel %vm956_vm8, %v955_v34, %v866_v26 }
  0xb1   : > { %1095 = vmatmul.mubr.bf16.vlgmr.msra.gmra.mrb[0].mxu0 %v967_v29 }
  0xb2   : > { %1657 = vmatprep.mubr.msk.bf16.mxu0 %vm907_vm3, %v1644_v6 }
  0xb3   : > { %v738_v9 = vpop.permute.xlu0 %737  ;;  %v894_v10 = vpop.permute.xlu1 %893 }
  0xb4   : > { %v976_v38 = vsel %vm965_vm9, %v964_v36, %v894_v10  ;;  %v913_v39 = vsel %vm907_vm3, %v1612_v15, %v738_v9 }
  0xb5   : > { %1119 = vmatmul.mubr.bf16.vlgmr.msra.gmra.mrb[0].mxu1 %v976_v38 }
  0xb6   : > { %1731 = vmatpush3.bf16.msra.mxu1 %v2297_v43  ;;  %1732 = vmatprep.mubr.msk.bf16.mxu1 %vm907_vm3, %v2174_v47 }
  0xb7   : > { %v786_v40 = vpop.permute.xlu0 %785  ;;  %v758_v42 = vpop.permute.xlu1 %757 }
  0xb8   : > { %v924_v44 = vsel %vm920_vm4, %v913_v39, %v758_v42 }
  0xb9   : > { %v933_v50 = vsel %vm929_vm5, %v924_v44, %v786_v40 }
  0xbb   : > { %v834_v51 = vpop.permute.xlu0 %833  ;;  %v814_v52 = vpop.permute.xlu1 %813 }
  0xbc   : > { %v942_v55 = vsel %vm938_vm6, %v933_v50, %v814_v52 }
  0xbd   : > { %1733 = vmatmul.mubr.msk.bf16.vlgmr.msra.gmra.mrb[4].mxu1 %vm907_vm3, %v2341_v35  ;;  %v951_v4 = vsel %vm947_vm7, %v942_v55, %v834_v51 }
  0xbe   : > { %1736 = vmatprep.mubr.msk.bf16.mxu1 %vm907_vm3, %v2387_v63 }
  0xbf   : > { %v890_v8 = vpop.permute.xlu0 %889  ;;  %v862_v43 = vpop.permute.xlu1 %861 }
  0xc0   : > { %v960_v47 = vsel %vm956_vm8, %v951_v4, %v862_v43 }
  0xc1   : > { %v970_v15 = vsel %vm965_vm9, %v960_v47, %v890_v8 }
  0xc2   : > { %1103 = vmatmul.mubr.bf16.gmra.mrb[4].mxu0 %v970_v15 }
  0xc3   : > { %v740_v57 = vpop.permute.xlu1 %739  ;;  %v760_v58 = vpop.permute.xlu0 %759  ;;  %1658 = vmatprep.mubr.msk.bf16.mxu0 %vm907_vm3, %v1645_v53 }
  0xc4   : > { %v916_v35 = vsel %vm907_vm3, %v1613_v31, %v740_v57 }
  0xc5   : > { %1737 = vmatmul.mubr.msk.bf16.gmra.mrb[8].mxu1 %vm907_vm3, %v2142_v18  ;;  %v926_v63 = vsel %vm920_vm4, %v916_v35, %v760_v58 }
  0xc7   : > { %v788_v59 = vpop.permute.xlu1 %787  ;;  %v816_v60 = vpop.permute.xlu0 %815 }
  0xc8   : > { %v935_v56 = vsel %vm929_vm5, %v926_v63, %v788_v59 }
  0xc9   : > { %v944_v41 = vsel %vm938_vm6, %v935_v56, %v816_v60 }
  0xcb   : > { %v836_v49 = vpop.permute.xlu1 %835  ;;  %v864_v2 = vpop.permute.xlu0 %863 }
  0xcc   : > { %v953_v3 = vsel %vm947_vm7, %v944_v41, %v836_v49 }
  0xcd   : > { %v962_v32 = vsel %vm956_vm8, %v953_v3, %v864_v2 }
  0xcf   : > { %v892_v27 = vpop.permute.xlu1 %891 }
  0xd0   : > { %v973_v33 = vsel %vm965_vm9, %v962_v32, %v892_v27 }
  0xd1   : > { %1111 = vmatmul.mubr.bf16.gmra.mrb[8].mxu0 %v973_v33 }
 0x184   : > { %v1096_v18 = vpop.f32.mrb[0].mxu0 }
 0x185   : > { %v1098_v31 = vpop.f32.mrb[1].mxu0  ;;  %v1157_v0 = vmul.f32 %v1096_v18, %v1096_v18 }
 0x186   : > { %v1099_v37 = vpop.f32.mrb[2].mxu0 }
 0x187   : > { %v1682_v5 = vpack.c.bf16 %v1099_v37, %v1096_v18  ;;  %v1143_v6 = vadd.f32 %v1099_v37, %v1096_v18  ;;  %v1158_v45 = vmul.f32 %v1099_v37, %v1099_v37  ;;  %v1101_v53 = vpop.f32.mrb[3].mxu0 }
 0x188   : > { %v2499_v11 = vpop.f32.mrb[0].mxu1 }
 0x189   : > { %1683 = vst [vmem:[%s2501_s28] sm:$0xff] %v1682_v5   ;;  %v1165_v12 = vadd.f32 %v1158_v45, %v1157_v0  ;;  %v1122_v13 = vpop.f32.mrb[1].mxu1 }
 0x18a   : > { %v2504_v46 = vpop.f32.mrb[2].mxu1 }
 0x18b   : > { %v1697_v16 = vpack.c.bf16 %v2504_v46, %v2499_v11  ;;  %v1125_v17 = vpop.f32.mrb[3].mxu1 }
 0x18d   : > { %1721 = vst [vmem:[%s2501_s28 + $0x18] sm:$0xff] %v1697_v16  }
 0x190   : > { %v1734_v19 = vpop.f32.mrb[4].mxu1 }
 0x191   : > { %v1233_v7 = vpop.f32.mrb[5].mxu1  ;;  %v1296_v21 = vmul.f32 %v1734_v19, %v1734_v19 }
 0x192   : > { %v1294_v22 = vmul.f32 %v1233_v7, %v1233_v7  ;;  %v1735_v28 = vpop.f32.mrb[6].mxu1 }
 0x193   : > { %v1707_v62 = vpack.c.bf16 %v1735_v28, %v1734_v19  ;;  %v1236_v20 = vpop.f32.mrb[7].mxu1  ;;  %v1297_v30 = vmul.f32 %v1735_v28, %v1735_v28 }
 0x194   : > { %v1702_v1 = vpack.c.bf16 %v1236_v20, %v1233_v7  ;;  %v1280_v23 = vadd.f32 %v1236_v20, %v1233_v7  ;;  %v1295_v24 = vmul.f32 %v1236_v20, %v1236_v20  ;;  %v1163_v7 = vmul.f32 %v2499_v11, %v2499_v11 }
 0x195   : > { %1722 = vst [vmem:[%s2509_s18 + $0x8] sm:$0xff] %v1707_v62   ;;  %v1104_v61 = vpop.f32.mrb[4].mxu0 }
 0x196   : > { %1703 = vst [vmem:[%s2509_s18] sm:$0xff] %v1702_v1   ;;  %v1281_v25 = vadd.f32 %v1734_v19, %v1280_v23  ;;  %v1302_v48 = vadd.f32 %v1295_v24, %v1294_v22  ;;  %v1144_v54 = vadd.f32 %v1143_v6, %v1104_v61  ;;  %v1159_v14 = vmul.f32 %v1104_v61, %v1104_v61  ;;  %v1106_v26 = vpop.f32.mrb[5].mxu0 }
 0x197   : > { %v1107_v29 = vpop.f32.mrb[6].mxu0 }
 0x198   : > { %v1303_v34 = vadd.f32 %v1302_v48, %v1296_v21  ;;  %v1166_v9 = vadd.f32 %v1165_v12, %v1159_v14  ;;  %v1738_v36 = vpop.f32.mrb[8].mxu1  ;;  %v1687_v10 = vpack.c.bf16 %v1107_v29, %v1104_v61  ;;  %v1145_v38 = vadd.f32 %v1144_v54, %v1107_v29  ;;  %v1109_v39 = vpop.f32.mrb[7].mxu0 }
 0x199   : > { %v1160_v40 = vmul.f32 %v1107_v29, %v1107_v29  ;;  %v1249_v42 = vpop.f32.mrb[9].mxu1  ;;  %v1282_v44 = vadd.f32 %v1735_v28, %v1281_v25  ;;  %v1300_v47 = vmul.f32 %v1738_v36, %v1738_v36 }
 0x19a   : > { %1719 = vst [vmem:[%s2501_s28 + $0x8] sm:$0xff] %v1687_v10   ;;  %v1298_v50 = vmul.f32 %v1249_v42, %v1249_v42  ;;  %v1304_v51 = vadd.f32 %v1303_v34, %v1297_v30  ;;  %v1739_v52 = vpop.f32.mrb[10].mxu1 }
 0x19b   : > { %v1167_v55 = vadd.f32 %v1166_v9, %v1160_v40  ;;  %v1283_v4 = vadd.f32 %v1282_v44, %v1249_v42  ;;  %v1717_v8 = vpack.c.bf16 %v1739_v52, %v1738_v36  ;;  %v1252_v43 = vpop.f32.mrb[11].mxu1  ;;  %v1301_v63 = vmul.f32 %v1739_v52, %v1739_v52 }
 0x19c   : > { %v1305_v15 = vadd.f32 %v1304_v51, %v1298_v50  ;;  %v1712_v57 = vpack.c.bf16 %v1252_v43, %v1249_v42  ;;  %v1299_v58 = vmul.f32 %v1252_v43, %v1252_v43 }
 0x19d   : > { %1724 = vst [vmem:[%s2509_s18 + $0x18] sm:$0xff] %v1717_v8   ;;  %v1284_v35 = vadd.f32 %v1283_v4, %v1252_v43 }
 0x19e   : > { %1723 = vst [vmem:[%s2509_s18 + $0x10] sm:$0xff] %v1712_v57   ;;  %v1306_v59 = vadd.f32 %v1305_v15, %v1299_v58 }
 0x19f   : > { %v1285_v60 = vadd.f32 %v1738_v36, %v1284_v35 }
 0x1a0   : > { %v1307_v56 = vadd.f32 %v1306_v59, %v1300_v47 }
 0x1a1   : > { %v1286_v41 = vadd.f32 %v1739_v52, %v1285_v60 }
 0x1a2   : > { %v1308_v49 = vadd.f32 %v1307_v56, %v1301_v63 }
 0x1a3   : > { %v1287_v2 = vrot.slane %v1286_v41, 4 }
 0x1a4   : > { %v1309_v3 = vrot.slane %v1308_v49, 4  ;;  %v1112_v32 = vpop.f32.mrb[8].mxu0 }
 0x1a5   : > { %v1288_v27 = vadd.f32 %v1287_v2, %v1286_v41  ;;  %v1146_v33 = vadd.f32 %v1145_v38, %v1112_v32  ;;  %v1161_v18 = vmul.f32 %v1112_v32, %v1112_v32  ;;  %v1114_v31 = vpop.f32.mrb[9].mxu0 }
 0x1a6   : > { %v1310_v37 = vadd.f32 %v1309_v3, %v1308_v49  ;;  %v1115_v0 = vpop.f32.mrb[10].mxu0 }
 0x1a7   : > { %v1289_v5 = vrot.slane %v1288_v27, 2  ;;  %v1168_v6 = vadd.f32 %v1167_v55, %v1161_v18  ;;  %v1692_v45 = vpack.c.bf16 %v1115_v0, %v1112_v32  ;;  %v1147_v53 = vadd.f32 %v1146_v33, %v1115_v0  ;;  %v1117_v12 = vpop.f32.mrb[11].mxu0 }
 0x1a8   : > { %v1162_v13 = vmul.f32 %v1115_v0, %v1115_v0  ;;  %v1311_v16 = vrot.slane %v1310_v37, 2 }
 0x1a9   : > { %1720 = vst [vmem:[%s2501_s28 + $0x10] sm:$0xff] %v1692_v45   ;;  %v1148_v17 = vadd.f32 %v1147_v53, %v2499_v11  ;;  %v1290_v19 = vadd.f32 %v1289_v5, %v1288_v27 }
 0x1aa   : > { %v1169_v22 = vadd.f32 %v1168_v6, %v1162_v13 }
 0x1ab   : > { %1869 = shalt.err (!%p1866_p3)
}
 0x1ac   : > { %s1870_s28 = scalar_lea.hbm %s2526_s13, 512  ;;  %s1874_s16 = scalar_lea.hbm %s2689_s3, 1024 }
 0x1ad   : > { %p1871_p4 = scmp.ne.s32.totalorder %s2526_s13, %s1870_s28  ;;  %p1875_p9 = scmp.lt.u32.totalorder %s2526_s13, %s2689_s3 }
 0x1ae   : > { %p1876_p10 = scmp.lt.u32.totalorder %s1874_s16, %s1870_s28  ;;  %p1878_p12 = scmp.lt.u32.totalorder %s1870_s28, %s2526_s13 }
 0x1af   : > { %p1872_p7 = pnand %p1871_p4, %p2100_p5 }
 0x1b0   : > { %p1877_p11 = por %p1876_p10, %p1875_p9 }
 0x1b1   : > { %p1873_p8 = pneg %p1872_p7 }
 0x1b2   : > { %p1879_p13 = por %p1878_p12, %p1877_p11 }
 0x1b4   : > { %p1880_p0 = pnand %p1879_p13, %p1873_p8 }
 0x1b6   : > { %1883 = shalt.err (!%p1880_p0)
}
 0x1b7   : > { %s2696_s15 = smov 4   ;;  %v1312_v11 = vadd.f32 %v1311_v16, %v1310_v37  ;;  %v1149_v28 = vadd.f32 %v1148_v17, %v2504_v46  ;;  %s1671_s26 = sshll.u32 %s2081_s25, 5  ;;  %v1291_v62 = vrot.slane %v1290_v19, 1  ;;  %v1164_v20 = vmul.f32 %v2504_v46, %v2504_v46 }
 0x1b8   : > { %1759 = dma.vmem_to_hbm [thread:$0]  (%p2100_p5), %s2518_s19, 512, %s2526_s13, %s1321_s14, %s2695_s12, %s2695_s12, %s2696_s15   ;;  %v1170_v21 = vadd.f32 %v1169_v22, %v1163_v7 }
 0x1b9   : > { %s272_s29 = scalar_lea.vmem [#allocation7], %s1551_s9  ;;  %v1313_v1 = vrot.slane %v1312_v11, 1  ;;  %v1150_v23 = vrot.slane %v1149_v28, 4  ;;  %v1292_v24 = vadd.f32 %v1291_v62, %v1290_v19  ;;  %s2570_s14 = scalar_lea.hbm %s2692_s6, %s1671_s26 }
 0x1ba   : > { %s1394_s10 = sshll.u32 %s272_s29, 4  ;;  %v1171_v30 = vadd.f32 %v1170_v21, %v1164_v20  ;;  %s1336_s28 = scalar_lea.sflag [#allocation8], %s2496_s17  ;;  %s2572_s10 = int_to_ptr.vmem [resolvable:$true] %s1394_s10 }
 0x1bb   : > { %v1314_v61 = vadd.f32 %v1313_v1, %v1312_v11  ;;  %v1151_v25 = vadd.f32 %v1150_v23, %v1149_v28  ;;  %1318 = vst [vmem:[%s272_s29] sm:$0x1] %v1292_v24  ;;  %s1884_s11 = scalar_lea.vmem %s2572_s10, 32  ;;  %s2022_s16 = smov [#allocation7]  }
 0x1bc   : > { %v1172_v46 = vrot.slane %v1171_v30, 4  ;;  %p1885_p1 = scmp.ne.s32.totalorder %s2572_s10, %s1884_s11  ;;  %s1888_s20 = sshll.u32 %s2022_s16, 4  ;;  %s1889_s20 = int_to_ptr.vmem [resolvable:$false] %s1888_s20 }
 0x1bd   : > { %1319 = vst [vmem:[%s272_s29 + $0x1] sm:$0x1] %v1314_v61  ;;  %v1152_v48 = vrot.slane %v1151_v25, 2  ;;  %s1890_s19 = scalar_lea.vmem %s1889_s20, 64  ;;  %p1891_p4 = scmp.lt.s32.totalorder %s2572_s10, %s1889_s20 }
 0x1be   : > { %p1886_p2 = pnand %p1885_p1, %p2100_p5  ;;  %p1892_p7 = scmp.lt.s32.totalorder %s1890_s19, %s1884_s11 }
 0x1c0   : > { %p1887_p3 = pneg %p1886_p2  ;;  %p1893_p8 = por %p1892_p7, %p1891_p4 }
 0x1c2   : > { %p1894_p9 = pnand %p1893_p8, %p1887_p3 }
 0x1c4   : > { %1897 = shalt.err (!%p1894_p9)
}
 0x1c5   : > { %s1898_s29 = scalar_lea.hbm %s2570_s14, 32  ;;  %s1902_s16 = scalar_lea.hbm %s2692_s6, 64 }
 0x1c6   : > { %p1899_p10 = scmp.ne.s32.totalorder %s2570_s14, %s1898_s29  ;;  %p1903_p13 = scmp.lt.u32.totalorder %s2570_s14, %s2692_s6 }
 0x1c7   : > { %p1904_p0 = scmp.lt.u32.totalorder %s1902_s16, %s1898_s29  ;;  %p1906_p2 = scmp.lt.u32.totalorder %s1898_s29, %s2570_s14 }
 0x1c8   : > { %p1900_p11 = pnand %p1899_p10, %p2100_p5 }
 0x1c9   : > { %p1905_p1 = por %p1904_p0, %p1903_p13 }
 0x1ca   : > { %p1901_p12 = pneg %p1900_p11 }
 0x1cb   : > { %p1907_p3 = por %p1906_p2, %p1905_p1 }
 0x1cd   : > { %p1908_p4 = pnand %p1907_p3, %p1901_p12 }
 0x1cf   : > { %1911 = shalt.err (!%p1908_p4)
}
 0x1d0   : > { %1762 = dma.vmem_to_hbm [thread:$0]  (%p2100_p5), %s2572_s10, 32, %s2570_s14, %s1336_s28   ;;  %v1173_v54 = vadd.f32 %v1172_v46, %v1171_v30  ;;  %v1153_v14 = vadd.f32 %v1152_v48, %v1151_v25 }
 0x1d1   : > { %s1325_s12 = sand.u32 1, %s2081_s25   ;;  %s258_s15 = scalar_lea.vmem [#allocation4], %s1551_s9 }
 0x1d2   : > { %v1174_v26 = vrot.slane %v1173_v54, 2  ;;  %v1154_v29 = vrot.slane %v1153_v14, 1  ;;  %s1365_s11 = sshll.u32 %s258_s15, 4  ;;  %s1378_s19 = sshll.u32 %s2509_s18, 4  ;;  %s2607_s11 = int_to_ptr.vmem [resolvable:$true] %s1365_s11  ;;  %s2609_s19 = int_to_ptr.vmem [resolvable:$true] %s1378_s19 }
 0x1d3   : > { %s2605_s10 = scalar_lea.hbm %s2690_s4, %s1671_s26  ;;  %s2701_s17 = sshll.u32 %s2081_s25, 9 }
 0x1d4   : > { %v1175_v34 = vadd.f32 %v1174_v26, %v1173_v54  ;;  %v1155_v9 = vadd.f32 %v1154_v29, %v1153_v14  ;;  %s2616_s18 = scalar_lea.hbm %s2691_s5, %s2701_s17  ;;  %s2618_s28 = scalar_lea.sflag [#allocation5], %s1325_s12 }
 0x1d5   : > { %s1912_s16 = scalar_lea.vmem %s2607_s11, 32  ;;  %s2023_s26 = smov [#allocation4]  }
 0x1d6   : > { %v1176_v36 = vrot.slane %v1175_v34, 1  ;;  %1316 = vst [vmem:[%s258_s15] sm:$0x1] %v1155_v9  ;;  %p1913_p7 = scmp.ne.s32.totalorder %s2607_s11, %s1912_s16  ;;  %s1916_s20 = sshll.u32 %s2023_s26, 4  ;;  %s1917_s20 = int_to_ptr.vmem [resolvable:$false] %s1916_s20 }
 0x1d7   : > { %s1918_s29 = scalar_lea.vmem %s1917_s20, 64  ;;  %p1919_p10 = scmp.lt.s32.totalorder %s2607_s11, %s1917_s20 }
 0x1d8   : > { %v1177_v10 = vadd.f32 %v1176_v36, %v1175_v34  ;;  %p1914_p8 = pnand %p1913_p7, %p2100_p5  ;;  %p1920_p11 = scmp.lt.s32.totalorder %s1918_s29, %s1912_s16 }
 0x1da   : > { %1317 = vst [vmem:[%s258_s15 + $0x1] sm:$0x1] %v1177_v10  ;;  %p1915_p9 = pneg %p1914_p8  ;;  %p1921_p12 = por %p1920_p11, %p1919_p10 }
 0x1dc   : > { %p1922_p13 = pnand %p1921_p12, %p1915_p9 }
 0x1de   : > { %1925 = shalt.err (!%p1922_p13)
}
 0x1df   : > { %s1926_s25 = scalar_lea.hbm %s2605_s10, 32  ;;  %s1930_s13 = scalar_lea.hbm %s2690_s4, 64 }
 0x1e0   : > { %p1927_p0 = scmp.ne.s32.totalorder %s2605_s10, %s1926_s25  ;;  %p1931_p3 = scmp.lt.u32.totalorder %s2605_s10, %s2690_s4 }
 0x1e1   : > { %p1932_p4 = scmp.lt.u32.totalorder %s1930_s13, %s1926_s25  ;;  %p1934_p8 = scmp.lt.u32.totalorder %s1926_s25, %s2605_s10 }
 0x1e2   : > { %p1928_p1 = pnand %p1927_p0, %p2100_p5 }
 0x1e3   : > { %p1933_p7 = por %p1932_p4, %p1931_p3 }
 0x1e4   : > { %p1929_p2 = pneg %p1928_p1 }
 0x1e5   : > { %p1935_p9 = por %p1934_p8, %p1933_p7 }
 0x1e7   : > { %p1936_p10 = pnand %p1935_p9, %p1929_p2 }
 0x1e9   : > { %1939 = shalt.err (!%p1936_p10)
}
 0x1ea   : > { %1760 = dma.vmem_to_hbm [thread:$0]  (%p2100_p5), %s2607_s11, 32, %s2605_s10, %s2618_s28  }
 0x1eb   : > { %s1940_s14 = scalar_lea.vmem %s2609_s19, 512  ;;  %s2024_s16 = smov [#allocation6]  }
 0x1ec   : > { %p1941_p11 = scmp.ne.s32.totalorder %s2609_s19, %s1940_s14  ;;  %s1944_s26 = sshll.u32 %s2024_s16, 4  ;;  %s1945_s26 = int_to_ptr.vmem [resolvable:$false] %s1944_s26 }
 0x1ed   : > { %s1946_s20 = scalar_lea.vmem %s1945_s26, 1024  ;;  %p1947_p0 = scmp.lt.s32.totalorder %s2609_s19, %s1945_s26 }
 0x1ee   : > { %p1942_p12 = pnand %p1941_p11, %p2100_p5  ;;  %p1948_p1 = scmp.lt.s32.totalorder %s1946_s20, %s1940_s14 }
 0x1f0   : > { %p1943_p13 = pneg %p1942_p12  ;;  %p1949_p2 = por %p1948_p1, %p1947_p0 }
 0x1f2   : > { %p1950_p3 = pnand %p1949_p2, %p1943_p13 }
 0x1f4   : > { %1953 = shalt.err (!%p1950_p3)
}
 0x1f5   : > { %s1954_s11 = scalar_lea.hbm %s2616_s18, 512  ;;  %s1958_s25 = scalar_lea.hbm %s2691_s5, 1024 }
 0x1f6   : > { %p1955_p4 = scmp.ne.s32.totalorder %s2616_s18, %s1954_s11  ;;  %p1959_p9 = scmp.lt.u32.totalorder %s2616_s18, %s2691_s5 }
 0x1f7   : > { %p1960_p10 = scmp.lt.u32.totalorder %s1958_s25, %s1954_s11  ;;  %p1962_p12 = scmp.lt.u32.totalorder %s1954_s11, %s2616_s18 }
 0x1f8   : > { %p1956_p7 = pnand %p1955_p4, %p2100_p5 }
 0x1f9   : > { %p1961_p11 = por %p1960_p10, %p1959_p9 }
 0x1fa   : > { %p1957_p8 = pneg %p1956_p7 }
 0x1fb   : > { %p1963_p13 = por %p1962_p12, %p1961_p11 }
 0x1fd   : > { %p1964_p0 = pnand %p1963_p13, %p1957_p8 }
 0x1ff   : > { %1967 = shalt.err (!%p1964_p0)
}
 0x200   : > { %s2702_s13 = smov 4   ;;  %s2703_s17 = smov 64  }
 0x201   : > { %1761 = dma.vmem_to_hbm [thread:$0]  (%p2100_p5), %s2609_s19, 512, %s2616_s18, %s2618_s28, %s2703_s17, %s2703_s17, %s2702_s13  }
 0x202 PF: > { %p1780_p1 = scmp.ge.s32.totalorder %s2010_s24, 2  ;;  %s1406_s9 = sand.u32 1, %s1998_s21  }
 0x203   : > { %s1407_s14 = scalar_lea.sflag [#allocation3], %s1406_s9 }
 0x204   : > { %p1768_p2 = pnand %p1780_p1, %p2104_p6 }
 0x206   : > { %1985 = dma.done.wait (!%p1768_p2), %s1407_s14, 512  }
 0x207   : > { %1987 = vsyncadd (!%p1768_p2), %s1407_s14, 4294966784  ;;  %s2704_s7 = sadd.s32 4294967294, %s2010_s24  }
 0x208   : > { %s1415_s16 = sand.u32 1, %s2704_s7  }
 0x209   : > { %s1416_s26 = scalar_lea.sflag [#allocation5], %s1415_s16 }
 0x20a   : > { %1989 = dma.done.wait (!%p1768_p2), %s1416_s26, 544  }
 0x20b   : > { %1991 = vsyncadd (!%p1768_p2), %s1416_s26, 4294966752  ;;  %s1434_s20 = scalar_lea.sflag [#allocation8], %s1406_s9 }
 0x20c   : > { %1993 = dma.done.wait (!%p1768_p2), %s1434_s20, 32  }
 0x20d   : > { %1995 = vsyncadd (!%p1768_p2), %s1434_s20, 4294967264  ;;  %p23_p5 = scmp.ge.s32.totalorder %s2085_s27, 4   ;;  %s2705_s21 = smov %s2002_s22 }
 0x20e   : > { %s2706_s22 = smov %s2006_s23  ;;  %s2707_s23 = smov %s2098_s30 }
 0x20f   : > { %s2708_s24 = smov %s2085_s27  ;;  %25 = sbr.rel (!%p23_p5) target bundleno = 7 (0x7), region = 121 }
 0x216   :  { %1439 = vsyncpa [#allocation3], 1 }
 0x217   :  { %1441 = vsyncpa [#allocation3 + $0x1], 1 }
 0x218   :  { %1442 = vsyncpa [#allocation5], 1 }
 0x219   :  { %1444 = vsyncpa [#allocation5 + $0x1], 1 }
 0x21a   :  { %1445 = vsyncpa [#allocation8], 1 }
 0x21b   :  { %1447 = vsyncpa [#allocation8 + $0x1], 1 }

</bundles_post_ra>
